<compile_context>
chip_gen: v7x
topology: tpu7x:2x2x1
jax: 0.10.0
libtpu: 0.0.40
codegen_flags: <defaults>
</compile_context>

<pallas_src>
import jax
import jax.numpy as jnp
from jax import lax
from jax.experimental import pallas as pl
from jax.experimental.pallas import tpu as pltpu

# Small, forward-consistent shapes (original module: 250 x 160 x 3).
IMAGE_HEIGHT = 18
IMAGE_WIDTH = 16
INPUT_CHANNELS = 3
NUM_FEATURES = 10
CONV_OUT = 32
KH = KW = 2  # conv1 kernel size

# ---- static geometry --------------------------------------------------------
# torch forward: numpy .transpose() reverses (H, W, C) -> (C, W, H); the conv then
# runs over spatial dims (W, H) = (16, 18).
CONV_H = IMAGE_WIDTH               # 16  first conv spatial dim  (index i, fast axis)
CONV_W = IMAGE_HEIGHT              # 18  second conv spatial dim (index j, slow axis)
H_OUT = CONV_H - KH + 1            # 15
W_OUT = CONV_W - KW + 1            # 17
HP, WP = H_OUT // 2, W_OUT // 2    # 7, 8   (floor maxpool, like PyTorch)
NPIX = CONV_H * CONV_W             # 288 flat pixels; flat row index q = CONV_H*j + i
# A conv tap (di, dj) / pool-window offset is the constant row shift CONV_H*dj + di.
TAPS = ((0, 0), (1, 0), (0, 1), (1, 1))
OFFS = tuple(CONV_H * dj + di for (di, dj) in TAPS)   # (0, 1, 16, 17)

POOL_PAD = 8                       # HP (=7) padded to a full sublane group
NPOOL_PAD = WP * POOL_PAD          # 64 rows of the padded pooled tile
# Row extents, padded so every strided pool read stays in-bounds:
#   pooled(ph, pw) = max_{a,b in {0,1}} y[32*pw + 16*b + 2*ph + a]
# and the pad row ph=7 reads z rows up to 32*(WP-1) + 16 + 14 = 254.
NZ = 32 * (WP - 1) + CONV_H + 2 * (POOL_PAD - 1) + 1   # 255 rows of z = max-over-i
NY = NZ + 1                                            # 256 rows of relu(conv)

assert OFFS == (0, 1, CONV_H, CONV_H + 1)
assert NY % 8 == 0 and NZ == NY - 1
assert NY + OFFS[-1] <= NPIX            # conv LHS slices stay inside the pixel table
assert 32 * (WP - 1) + CONV_H + 2 * (POOL_PAD - 1) < NZ   # strided reads in-bounds


# ----------------------------- fused Pallas kernel --------------------------- #

def fused_cnn_kernel(x12_ref, w12_ref, bconv_ref, wfc_ref, bfc_ref, out_ref,
                     y_ref, z_ref):
    """conv1(2x2) + bias + ReLU + maxpool(2x2) + flatten + fc1 in one body.

    x12_ref : (NY, 12)            tap-concatenated image rows (K=12 conv LHS)
    w12_ref : (12, 32)            conv weight, rows grouped per 2x2 tap
    bconv_ref: (1, 32)
    wfc_ref : (10, 64, 32)        fc1 weight permuted/padded to [f, pw*8 + ph, c]
                                  (rows with ph == 7 are exactly zero)
    bfc_ref : (1, 10)
    out_ref : (1, 10)             lane-dense logits row
    y_ref   : (NY, 32)  scratch   relu(conv) rows, q = 16*j + i
    z_ref   : (NZ, 32)  scratch   max over the i-direction of the pool window
    """
    # Convolution: ONE K=12 MXU pass, + bias + ReLU.
    y_ref[...] = jnp.maximum(
        jnp.dot(x12_ref[...], w12_ref[...], preferred_element_type=jnp.float32)
        + bconv_ref[...], 0.0)

    # 2x2 max-pool, step 1: max over i (+1 row shift; the only misaligned slice).
    z_ref[...] = jnp.maximum(y_ref[pl.ds(0, NZ), :], y_ref[pl.ds(1, NZ), :])

    # 2x2 max-pool, step 2: max over j (+16, sublane-aligned) fused with the
    # stride-2 downsample — one pool column (pw) per iteration, 8 rows each
    # (7 real pool rows + 1 finite pad row that meets zero FC weights).
    chunks = []
    for pw in range(WP):
        a = z_ref[pl.ds(32 * pw, POOL_PAD, stride=2), :]            # (8, 32)
        b = z_ref[pl.ds(32 * pw + CONV_H, POOL_PAD, stride=2), :]   # (8, 32)
        chunks.append(jnp.maximum(a, b))
    pooled = jnp.concatenate(chunks, axis=0)                        # (64, 32)

    # fc1: out[0, f] = sum_{p,c} pooled[p, c] * wfc[f, p, c] + bfc[f]
    # One 8-vreg multiply + full reduce per feature; result assembled lane-dense.
    lane = lax.broadcasted_iota(jnp.int32, (1, NUM_FEATURES), 1)
    logits = bfc_ref[...]                                           # (1, 10)
    for f in range(NUM_FEATURES):
        s = jnp.sum(pooled * wfc_ref[f], keepdims=True)             # (1, 1)
        logits = logits + jnp.where(lane == f, s, 0.0)
    out_ref[...] = logits


# ------------------------------ forward pass --------------------------------- #

@jax.jit
def cnn_forward(x_hwc, params):
    conv_w, conv_b, fc_w, fc_b = params

    # Free reshape: (H, W, C) -> (NPIX, C) with row index q = CONV_H*j + i.
    x_flat = x_hwc.reshape(NPIX, INPUT_CHANNELS).astype(jnp.float32)

    # (NY, 12) tap-concatenated conv LHS: column block t = pixel rows shifted by
    # OFFS[t].  Tiny XLA gather (~12 KB) that lets the kernel do one K=12 MXU pass.
    x12 = jnp.concatenate([x_flat[off:off + NY, :] for off in OFFS], axis=1)

    # ---- one-time parameter prep (constant-foldable; tiny) -------------------
    # Conv weight with rows grouped per tap, matching x12's column order.
    w12 = jnp.concatenate([conv_w[:, :, di, dj].T for (di, dj) in TAPS],
                          axis=0).astype(jnp.float32)               # (12, 32)
    b_conv = conv_b.reshape(1, CONV_OUT).astype(jnp.float32)

    # fc1 weight: torch flat order is (c, ph, pw); permute+pad to [f, pw*8+ph, c]
    # so it matches the kernel's padded pooled layout (pad rows ph==7 are zero).
    w4 = fc_w.reshape(NUM_FEATURES, CONV_OUT, HP, WP)               # [f, c, ph, pw]
    w4 = jnp.transpose(w4, (0, 3, 2, 1))                            # [f, pw, ph, c]
    w4 = jnp.pad(w4, ((0, 0), (0, 0), (0, POOL_PAD - HP), (0, 0)))  # [f, pw, 8, c]
    w_fc = w4.reshape(NUM_FEATURES, NPOOL_PAD, CONV_OUT).astype(jnp.float32)
    b_fc = fc_b.reshape(1, NUM_FEATURES).astype(jnp.float32)

    return pl.pallas_call(
        fused_cnn_kernel,
        out_shape=jax.ShapeDtypeStruct((1, NUM_FEATURES), jnp.float32),
        scratch_shapes=[
            pltpu.VMEM((NY, CONV_OUT), jnp.float32),
            pltpu.VMEM((NZ, CONV_OUT), jnp.float32),
        ],
    )(x12, w12, b_conv, w_fc, b_fc)


# --------------------------- pure-JAX reference ------------------------------ #

def reference(x_hwc, params):
    conv_w, conv_b, fc_w, fc_b = params
    x = jnp.transpose(x_hwc).astype(jnp.float32)[None]  # (1, C, W, H) = (1, 3, 16, 18)
    y = lax.conv_general_dilated(
        x, conv_w, (1, 1), "VALID",
        dimension_numbers=("NCHW", "OIHW", "NCHW"))
    y = jnp.maximum(y + conv_b[None, :, None, None], 0.0)
    y = lax.reduce_window(y, -jnp.inf, lax.max,
                          (1, 1, 2, 2), (1, 1, 2, 2), "VALID")
    flat = y.reshape(1, -1)
    return flat @ fc_w.T + fc_b[None]


# ---------------------------------- main -------------------------------------- #

if __name__ == "__main__":
    key = jax.random.PRNGKey(0)
    k1, k2, k3, k4, k5 = jax.random.split(key, 5)

    # Input image as the torch module receives it: (H, W, C) before .transpose()
    x = jax.random.normal(k1, (IMAGE_HEIGHT, IMAGE_WIDTH, INPUT_CHANNELS),
                          jnp.float32)

    # Deterministic synthetic parameters (same shapes as the torch module).
    conv_w = jax.random.normal(k2, (CONV_OUT, INPUT_CHANNELS, KH, KW),
                               jnp.float32) * 0.1
    conv_b = jax.random.normal(k3, (CONV_OUT,), jnp.float32) * 0.1
    input_dims = CONV_OUT * HP * WP  # 32 * 7 * 8 = 1792, same as module formula
    fc_w = jax.random.normal(k4, (NUM_FEATURES, input_dims), jnp.float32) * 0.02
    fc_b = jax.random.normal(k5, (NUM_FEATURES,), jnp.float32) * 0.02
    params = (conv_w, conv_b, fc_w, fc_b)

    out = cnn_forward(x, params)
    jax.block_until_ready(out)

    ref = reference(x, params)
    assert out.shape == (1, NUM_FEATURES), out.shape
    err = jnp.max(jnp.abs(out - ref))
    assert jnp.allclose(out, ref, rtol=1e-3, atol=1e-3), f"max err {err}"
    print("KERNEL_OK")
</pallas_src>

<mosaic_0001>
module attributes {stable_mosaic.version = 11 : i64} {
  func.func @fused_cnn_kernel(%arg0: memref<256x12xf32, #tpu.memory_space<vmem>>, %arg1: memref<12x32xf32, #tpu.memory_space<vmem>>, %arg2: memref<1x32xf32, #tpu.memory_space<vmem>>, %arg3: memref<10x64x32xf32, #tpu.memory_space<vmem>>, %arg4: memref<1x10xf32, #tpu.memory_space<vmem>>, %arg5: memref<1x10xf32, #tpu.memory_space<vmem>>, %arg6: memref<256x32xf32, #tpu.memory_space<vmem>>, %arg7: memref<255x32xf32, #tpu.memory_space<vmem>>) attributes {dimension_semantics = [], scalar_prefetch = 0 : i64, scratch_operands = 2 : i64, tpu.core_type = #tpu.core_type<tc>} {
    %c0 = arith.constant 0 : index
    %c0_0 = arith.constant 0 : index
    %0 = vector.load %arg0[%c0, %c0_0] : memref<256x12xf32, #tpu.memory_space<vmem>>, vector<256x12xf32>
    %c0_1 = arith.constant 0 : index
    %c0_2 = arith.constant 0 : index
    %1 = vector.load %arg1[%c0_1, %c0_2] : memref<12x32xf32, #tpu.memory_space<vmem>>, vector<12x32xf32>
    %cst = arith.constant dense<0.000000e+00> : vector<256x32xf32>
    %2 = tpu.matmul %0, %1, %cst {dimension_numbers = #tpu.dot_dimension_numbers<[1], [0], [0], [1], [0, 0, 1, 1], [], []>} : vector<256x12xf32>, vector<12x32xf32>, vector<256x32xf32> -> vector<256x32xf32>
    %c0_3 = arith.constant 0 : index
    %c0_4 = arith.constant 0 : index
    %3 = vector.load %arg2[%c0_3, %c0_4] : memref<1x32xf32, #tpu.memory_space<vmem>>, vector<1x32xf32>
    %4 = vector.broadcast %3 : vector<1x32xf32> to vector<256x32xf32>
    %5 = arith.addf %2, %4 : vector<256x32xf32>
    %cst_5 = arith.constant 0.000000e+00 : f32
    %6 = vector.broadcast %cst_5 : f32 to vector<256x32xf32>
    %7 = arith.maximumf %5, %6 : vector<256x32xf32>
    %c0_6 = arith.constant 0 : index
    %c0_7 = arith.constant 0 : index
    %8 = vector.load %arg6[%c0_6, %c0_7] : memref<256x32xf32, #tpu.memory_space<vmem>>, vector<256x32xf32>
    tpu.vector_store %arg6[%c0_6, %c0_7], %7 {strides = array<i32>} : memref<256x32xf32, #tpu.memory_space<vmem>>, vector<256x32xf32>,
    %c0_8 = arith.constant 0 : index
    %c0_9 = arith.constant 0 : index
    %9 = vector.load %arg6[%c0_8, %c0_9] : memref<256x32xf32, #tpu.memory_space<vmem>>, vector<255x32xf32>
    %c1 = arith.constant 1 : index
    %c0_10 = arith.constant 0 : index
    %10 = vector.load %arg6[%c1, %c0_10] : memref<256x32xf32, #tpu.memory_space<vmem>>, vector<255x32xf32>
    %11 = arith.maximumf %9, %10 : vector<255x32xf32>
    %c0_11 = arith.constant 0 : index
    %c0_12 = arith.constant 0 : index
    %12 = vector.load %arg7[%c0_11, %c0_12] : memref<255x32xf32, #tpu.memory_space<vmem>>, vector<255x32xf32>
    tpu.vector_store %arg7[%c0_11, %c0_12], %11 {strides = array<i32>} : memref<255x32xf32, #tpu.memory_space<vmem>>, vector<255x32xf32>,
    %c0_13 = arith.constant 0 : index
    %c0_14 = arith.constant 0 : index
    %13 = tpu.strided_load %arg7[%c0_13, %c0_14] {strides = array<i32: 2, 1>} : memref<255x32xf32, #tpu.memory_space<vmem>>, vector<8x32xf32>
    %c16 = arith.constant 16 : index
    %c0_15 = arith.constant 0 : index
    %14 = tpu.strided_load %arg7[%c16, %c0_15] {strides = array<i32: 2, 1>} : memref<255x32xf32, #tpu.memory_space<vmem>>, vector<8x32xf32>
    %15 = arith.maximumf %13, %14 : vector<8x32xf32>
    %c32 = arith.constant 32 : index
    %c0_16 = arith.constant 0 : index
    %16 = tpu.strided_load %arg7[%c32, %c0_16] {strides = array<i32: 2, 1>} : memref<255x32xf32, #tpu.memory_space<vmem>>, vector<8x32xf32>
    %c48 = arith.constant 48 : index
    %c0_17 = arith.constant 0 : index
    %17 = tpu.strided_load %arg7[%c48, %c0_17] {strides = array<i32: 2, 1>} : memref<255x32xf32, #tpu.memory_space<vmem>>, vector<8x32xf32>
    %18 = arith.maximumf %16, %17 : vector<8x32xf32>
    %c64 = arith.constant 64 : index
    %c0_18 = arith.constant 0 : index
    %19 = tpu.strided_load %arg7[%c64, %c0_18] {strides = array<i32: 2, 1>} : memref<255x32xf32, #tpu.memory_space<vmem>>, vector<8x32xf32>
    %c80 = arith.constant 80 : index
    %c0_19 = arith.constant 0 : index
    %20 = tpu.strided_load %arg7[%c80, %c0_19] {strides = array<i32: 2, 1>} : memref<255x32xf32, #tpu.memory_space<vmem>>, vector<8x32xf32>
    %21 = arith.maximumf %19, %20 : vector<8x32xf32>
    %c96 = arith.constant 96 : index
    %c0_20 = arith.constant 0 : index
    %22 = tpu.strided_load %arg7[%c96, %c0_20] {strides = array<i32: 2, 1>} : memref<255x32xf32, #tpu.memory_space<vmem>>, vector<8x32xf32>
    %c112 = arith.constant 112 : index
    %c0_21 = arith.constant 0 : index
    %23 = tpu.strided_load %arg7[%c112, %c0_21] {strides = array<i32: 2, 1>} : memref<255x32xf32, #tpu.memory_space<vmem>>, vector<8x32xf32>
    %24 = arith.maximumf %22, %23 : vector<8x32xf32>
    %c128 = arith.constant 128 : index
    %c0_22 = arith.constant 0 : index
    %25 = tpu.strided_load %arg7[%c128, %c0_22] {strides = array<i32: 2, 1>} : memref<255x32xf32, #tpu.memory_space<vmem>>, vector<8x32xf32>
    %c144 = arith.constant 144 : index
    %c0_23 = arith.constant 0 : index
    %26 = tpu.strided_load %arg7[%c144, %c0_23] {strides = array<i32: 2, 1>} : memref<255x32xf32, #tpu.memory_space<vmem>>, vector<8x32xf32>
    %27 = arith.maximumf %25, %26 : vector<8x32xf32>
    %c160 = arith.constant 160 : index
    %c0_24 = arith.constant 0 : index
    %28 = tpu.strided_load %arg7[%c160, %c0_24] {strides = array<i32: 2, 1>} : memref<255x32xf32, #tpu.memory_space<vmem>>, vector<8x32xf32>
    %c176 = arith.constant 176 : index
    %c0_25 = arith.constant 0 : index
    %29 = tpu.strided_load %arg7[%c176, %c0_25] {strides = array<i32: 2, 1>} : memref<255x32xf32, #tpu.memory_space<vmem>>, vector<8x32xf32>
    %30 = arith.maximumf %28, %29 : vector<8x32xf32>
    %c192 = arith.constant 192 : index
    %c0_26 = arith.constant 0 : index
    %31 = tpu.strided_load %arg7[%c192, %c0_26] {strides = array<i32: 2, 1>} : memref<255x32xf32, #tpu.memory_space<vmem>>, vector<8x32xf32>
    %c208 = arith.constant 208 : index
    %c0_27 = arith.constant 0 : index
    %32 = tpu.strided_load %arg7[%c208, %c0_27] {strides = array<i32: 2, 1>} : memref<255x32xf32, #tpu.memory_space<vmem>>, vector<8x32xf32>
    %33 = arith.maximumf %31, %32 : vector<8x32xf32>
    %c224 = arith.constant 224 : index
    %c0_28 = arith.constant 0 : index
    %34 = tpu.strided_load %arg7[%c224, %c0_28] {strides = array<i32: 2, 1>} : memref<255x32xf32, #tpu.memory_space<vmem>>, vector<8x32xf32>
    %c240 = arith.constant 240 : index
    %c0_29 = arith.constant 0 : index
    %35 = tpu.strided_load %arg7[%c240, %c0_29] {strides = array<i32: 2, 1>} : memref<255x32xf32, #tpu.memory_space<vmem>>, vector<8x32xf32>
    %36 = arith.maximumf %34, %35 : vector<8x32xf32>
    %37 = tpu.concatenate %15, %18, %21, %24, %27, %30, %33, %36 in 0 : vector<8x32xf32>, vector<8x32xf32>, vector<8x32xf32>, vector<8x32xf32>, vector<8x32xf32>, vector<8x32xf32>, vector<8x32xf32>, vector<8x32xf32> -> vector<64x32xf32>
    %38 = tpu.iota {dimensions = array<i32: 1>} : vector<1x10xi32>
    %c0_30 = arith.constant 0 : index
    %c0_31 = arith.constant 0 : index
    %39 = vector.load %arg4[%c0_30, %c0_31] : memref<1x10xf32, #tpu.memory_space<vmem>>, vector<1x10xf32>
    %c0_32 = arith.constant 0 : index
    %c0_33 = arith.constant 0 : index
    %c0_34 = arith.constant 0 : index
    %40 = vector.load %arg3[%c0_32, %c0_33, %c0_34] : memref<10x64x32xf32, #tpu.memory_space<vmem>>, vector<1x64x32xf32>
    %41 = vector.shape_cast %40 : vector<1x64x32xf32> to vector<64x32xf32>
    %42 = arith.mulf %37, %41 : vector<64x32xf32>
    %43 = vector.shape_cast %42 : vector<64x32xf32> to vector<1x64x32xf32>
    %cst_35 = arith.constant dense<0.000000e+00> : vector<1xf32>
    %44 = vector.multi_reduction <add>, %43, %cst_35 [1, 2] : vector<1x64x32xf32> to vector<1xf32>
    %45 = vector.shape_cast %44 : vector<1xf32> to vector<1x1x1xf32>
    %46 = vector.extract %45[0, 0, 0] : f32 from vector<1x1x1xf32>
    %47 = vector.broadcast %46 : f32 to vector<1x1xf32>
    %c0_i32 = arith.constant 0 : i32
    %48 = vector.broadcast %c0_i32 : i32 to vector<1x10xi32>
    %49 = arith.cmpi eq, %38, %48 : vector<1x10xi32>
    %cst_36 = arith.constant 0.000000e+00 : f32
    %50 = vector.shape_cast %47 : vector<1x1xf32> to vector<1x1xf32>
    %51 = vector.broadcast %50 : vector<1x1xf32> to vector<1x10xf32>
    %52 = vector.broadcast %cst_36 : f32 to vector<1x10xf32>
    %53 = arith.select %49, %51, %52 : vector<1x10xi1>, vector<1x10xf32>
    %54 = arith.addf %39, %53 : vector<1x10xf32>
    %c1_37 = arith.constant 1 : index
    %c0_38 = arith.constant 0 : index
    %c0_39 = arith.constant 0 : index
    %55 = vector.load %arg3[%c1_37, %c0_38, %c0_39] : memref<10x64x32xf32, #tpu.memory_space<vmem>>, vector<1x64x32xf32>
    %56 = vector.shape_cast %55 : vector<1x64x32xf32> to vector<64x32xf32>
    %57 = arith.mulf %37, %56 : vector<64x32xf32>
    %58 = vector.shape_cast %57 : vector<64x32xf32> to vector<1x64x32xf32>
    %cst_40 = arith.constant dense<0.000000e+00> : vector<1xf32>
    %59 = vector.multi_reduction <add>, %58, %cst_40 [1, 2] : vector<1x64x32xf32> to vector<1xf32>
    %60 = vector.shape_cast %59 : vector<1xf32> to vector<1x1x1xf32>
    %61 = vector.extract %60[0, 0, 0] : f32 from vector<1x1x1xf32>
    %62 = vector.broadcast %61 : f32 to vector<1x1xf32>
    %c1_i32 = arith.constant 1 : i32
    %63 = vector.broadcast %c1_i32 : i32 to vector<1x10xi32>
    %64 = arith.cmpi eq, %38, %63 : vector<1x10xi32>
    %cst_41 = arith.constant 0.000000e+00 : f32
    %65 = vector.shape_cast %62 : vector<1x1xf32> to vector<1x1xf32>
    %66 = vector.broadcast %65 : vector<1x1xf32> to vector<1x10xf32>
    %67 = vector.broadcast %cst_41 : f32 to vector<1x10xf32>
    %68 = arith.select %64, %66, %67 : vector<1x10xi1>, vector<1x10xf32>
    %69 = arith.addf %54, %68 : vector<1x10xf32>
    %c2 = arith.constant 2 : index
    %c0_42 = arith.constant 0 : index
    %c0_43 = arith.constant 0 : index
    %70 = vector.load %arg3[%c2, %c0_42, %c0_43] : memref<10x64x32xf32, #tpu.memory_space<vmem>>, vector<1x64x32xf32>
    %71 = vector.shape_cast %70 : vector<1x64x32xf32> to vector<64x32xf32>
    %72 = arith.mulf %37, %71 : vector<64x32xf32>
    %73 = vector.shape_cast %72 : vector<64x32xf32> to vector<1x64x32xf32>
    %cst_44 = arith.constant dense<0.000000e+00> : vector<1xf32>
    %74 = vector.multi_reduction <add>, %73, %cst_44 [1, 2] : vector<1x64x32xf32> to vector<1xf32>
    %75 = vector.shape_cast %74 : vector<1xf32> to vector<1x1x1xf32>
    %76 = vector.extract %75[0, 0, 0] : f32 from vector<1x1x1xf32>
    %77 = vector.broadcast %76 : f32 to vector<1x1xf32>
    %c2_i32 = arith.constant 2 : i32
    %78 = vector.broadcast %c2_i32 : i32 to vector<1x10xi32>
    %79 = arith.cmpi eq, %38, %78 : vector<1x10xi32>
    %cst_45 = arith.constant 0.000000e+00 : f32
    %80 = vector.shape_cast %77 : vector<1x1xf32> to vector<1x1xf32>
    %81 = vector.broadcast %80 : vector<1x1xf32> to vector<1x10xf32>
    %82 = vector.broadcast %cst_45 : f32 to vector<1x10xf32>
    %83 = arith.select %79, %81, %82 : vector<1x10xi1>, vector<1x10xf32>
    %84 = arith.addf %69, %83 : vector<1x10xf32>
    %c3 = arith.constant 3 : index
    %c0_46 = arith.constant 0 : index
    %c0_47 = arith.constant 0 : index
    %85 = vector.load %arg3[%c3, %c0_46, %c0_47] : memref<10x64x32xf32, #tpu.memory_space<vmem>>, vector<1x64x32xf32>
    %86 = vector.shape_cast %85 : vector<1x64x32xf32> to vector<64x32xf32>
    %87 = arith.mulf %37, %86 : vector<64x32xf32>
    %88 = vector.shape_cast %87 : vector<64x32xf32> to vector<1x64x32xf32>
    %cst_48 = arith.constant dense<0.000000e+00> : vector<1xf32>
    %89 = vector.multi_reduction <add>, %88, %cst_48 [1, 2] : vector<1x64x32xf32> to vector<1xf32>
    %90 = vector.shape_cast %89 : vector<1xf32> to vector<1x1x1xf32>
    %91 = vector.extract %90[0, 0, 0] : f32 from vector<1x1x1xf32>
    %92 = vector.broadcast %91 : f32 to vector<1x1xf32>
    %c3_i32 = arith.constant 3 : i32
    %93 = vector.broadcast %c3_i32 : i32 to vector<1x10xi32>
    %94 = arith.cmpi eq, %38, %93 : vector<1x10xi32>
    %cst_49 = arith.constant 0.000000e+00 : f32
    %95 = vector.shape_cast %92 : vector<1x1xf32> to vector<1x1xf32>
    %96 = vector.broadcast %95 : vector<1x1xf32> to vector<1x10xf32>
    %97 = vector.broadcast %cst_49 : f32 to vector<1x10xf32>
    %98 = arith.select %94, %96, %97 : vector<1x10xi1>, vector<1x10xf32>
    %99 = arith.addf %84, %98 : vector<1x10xf32>
    %c4 = arith.constant 4 : index
    %c0_50 = arith.constant 0 : index
    %c0_51 = arith.constant 0 : index
    %100 = vector.load %arg3[%c4, %c0_50, %c0_51] : memref<10x64x32xf32, #tpu.memory_space<vmem>>, vector<1x64x32xf32>
    %101 = vector.shape_cast %100 : vector<1x64x32xf32> to vector<64x32xf32>
    %102 = arith.mulf %37, %101 : vector<64x32xf32>
    %103 = vector.shape_cast %102 : vector<64x32xf32> to vector<1x64x32xf32>
    %cst_52 = arith.constant dense<0.000000e+00> : vector<1xf32>
    %104 = vector.multi_reduction <add>, %103, %cst_52 [1, 2] : vector<1x64x32xf32> to vector<1xf32>
    %105 = vector.shape_cast %104 : vector<1xf32> to vector<1x1x1xf32>
    %106 = vector.extract %105[0, 0, 0] : f32 from vector<1x1x1xf32>
    %107 = vector.broadcast %106 : f32 to vector<1x1xf32>
    %c4_i32 = arith.constant 4 : i32
    %108 = vector.broadcast %c4_i32 : i32 to vector<1x10xi32>
    %109 = arith.cmpi eq, %38, %108 : vector<1x10xi32>
    %cst_53 = arith.constant 0.000000e+00 : f32
    %110 = vector.shape_cast %107 : vector<1x1xf32> to vector<1x1xf32>
    %111 = vector.broadcast %110 : vector<1x1xf32> to vector<1x10xf32>
    %112 = vector.broadcast %cst_53 : f32 to vector<1x10xf32>
    %113 = arith.select %109, %111, %112 : vector<1x10xi1>, vector<1x10xf32>
    %114 = arith.addf %99, %113 : vector<1x10xf32>
    %c5 = arith.constant 5 : index
    %c0_54 = arith.constant 0 : index
    %c0_55 = arith.constant 0 : index
    %115 = vector.load %arg3[%c5, %c0_54, %c0_55] : memref<10x64x32xf32, #tpu.memory_space<vmem>>, vector<1x64x32xf32>
    %116 = vector.shape_cast %115 : vector<1x64x32xf32> to vector<64x32xf32>
    %117 = arith.mulf %37, %116 : vector<64x32xf32>
    %118 = vector.shape_cast %117 : vector<64x32xf32> to vector<1x64x32xf32>
    %cst_56 = arith.constant dense<0.000000e+00> : vector<1xf32>
    %119 = vector.multi_reduction <add>, %118, %cst_56 [1, 2] : vector<1x64x32xf32> to vector<1xf32>
    %120 = vector.shape_cast %119 : vector<1xf32> to vector<1x1x1xf32>
    %121 = vector.extract %120[0, 0, 0] : f32 from vector<1x1x1xf32>
    %122 = vector.broadcast %121 : f32 to vector<1x1xf32>
    %c5_i32 = arith.constant 5 : i32
    %123 = vector.broadcast %c5_i32 : i32 to vector<1x10xi32>
    %124 = arith.cmpi eq, %38, %123 : vector<1x10xi32>
    %cst_57 = arith.constant 0.000000e+00 : f32
    %125 = vector.shape_cast %122 : vector<1x1xf32> to vector<1x1xf32>
    %126 = vector.broadcast %125 : vector<1x1xf32> to vector<1x10xf32>
    %127 = vector.broadcast %cst_57 : f32 to vector<1x10xf32>
    %128 = arith.select %124, %126, %127 : vector<1x10xi1>, vector<1x10xf32>
    %129 = arith.addf %114, %128 : vector<1x10xf32>
    %c6 = arith.constant 6 : index
    %c0_58 = arith.constant 0 : index
    %c0_59 = arith.constant 0 : index
    %130 = vector.load %arg3[%c6, %c0_58, %c0_59] : memref<10x64x32xf32, #tpu.memory_space<vmem>>, vector<1x64x32xf32>
    %131 = vector.shape_cast %130 : vector<1x64x32xf32> to vector<64x32xf32>
    %132 = arith.mulf %37, %131 : vector<64x32xf32>
    %133 = vector.shape_cast %132 : vector<64x32xf32> to vector<1x64x32xf32>
    %cst_60 = arith.constant dense<0.000000e+00> : vector<1xf32>
    %134 = vector.multi_reduction <add>, %133, %cst_60 [1, 2] : vector<1x64x32xf32> to vector<1xf32>
    %135 = vector.shape_cast %134 : vector<1xf32> to vector<1x1x1xf32>
    %136 = vector.extract %135[0, 0, 0] : f32 from vector<1x1x1xf32>
    %137 = vector.broadcast %136 : f32 to vector<1x1xf32>
    %c6_i32 = arith.constant 6 : i32
    %138 = vector.broadcast %c6_i32 : i32 to vector<1x10xi32>
    %139 = arith.cmpi eq, %38, %138 : vector<1x10xi32>
    %cst_61 = arith.constant 0.000000e+00 : f32
    %140 = vector.shape_cast %137 : vector<1x1xf32> to vector<1x1xf32>
    %141 = vector.broadcast %140 : vector<1x1xf32> to vector<1x10xf32>
    %142 = vector.broadcast %cst_61 : f32 to vector<1x10xf32>
    %143 = arith.select %139, %141, %142 : vector<1x10xi1>, vector<1x10xf32>
    %144 = arith.addf %129, %143 : vector<1x10xf32>
    %c7 = arith.constant 7 : index
    %c0_62 = arith.constant 0 : index
    %c0_63 = arith.constant 0 : index
    %145 = vector.load %arg3[%c7, %c0_62, %c0_63] : memref<10x64x32xf32, #tpu.memory_space<vmem>>, vector<1x64x32xf32>
    %146 = vector.shape_cast %145 : vector<1x64x32xf32> to vector<64x32xf32>
    %147 = arith.mulf %37, %146 : vector<64x32xf32>
    %148 = vector.shape_cast %147 : vector<64x32xf32> to vector<1x64x32xf32>
    %cst_64 = arith.constant dense<0.000000e+00> : vector<1xf32>
    %149 = vector.multi_reduction <add>, %148, %cst_64 [1, 2] : vector<1x64x32xf32> to vector<1xf32>
    %150 = vector.shape_cast %149 : vector<1xf32> to vector<1x1x1xf32>
    %151 = vector.extract %150[0, 0, 0] : f32 from vector<1x1x1xf32>
    %152 = vector.broadcast %151 : f32 to vector<1x1xf32>
    %c7_i32 = arith.constant 7 : i32
    %153 = vector.broadcast %c7_i32 : i32 to vector<1x10xi32>
    %154 = arith.cmpi eq, %38, %153 : vector<1x10xi32>
    %cst_65 = arith.constant 0.000000e+00 : f32
    %155 = vector.shape_cast %152 : vector<1x1xf32> to vector<1x1xf32>
    %156 = vector.broadcast %155 : vector<1x1xf32> to vector<1x10xf32>
    %157 = vector.broadcast %cst_65 : f32 to vector<1x10xf32>
    %158 = arith.select %154, %156, %157 : vector<1x10xi1>, vector<1x10xf32>
    %159 = arith.addf %144, %158 : vector<1x10xf32>
    %c8 = arith.constant 8 : index
    %c0_66 = arith.constant 0 : index
    %c0_67 = arith.constant 0 : index
    %160 = vector.load %arg3[%c8, %c0_66, %c0_67] : memref<10x64x32xf32, #tpu.memory_space<vmem>>, vector<1x64x32xf32>
    %161 = vector.shape_cast %160 : vector<1x64x32xf32> to vector<64x32xf32>
    %162 = arith.mulf %37, %161 : vector<64x32xf32>
    %163 = vector.shape_cast %162 : vector<64x32xf32> to vector<1x64x32xf32>
    %cst_68 = arith.constant dense<0.000000e+00> : vector<1xf32>
    %164 = vector.multi_reduction <add>, %163, %cst_68 [1, 2] : vector<1x64x32xf32> to vector<1xf32>
    %165 = vector.shape_cast %164 : vector<1xf32> to vector<1x1x1xf32>
    %166 = vector.extract %165[0, 0, 0] : f32 from vector<1x1x1xf32>
    %167 = vector.broadcast %166 : f32 to vector<1x1xf32>
    %c8_i32 = arith.constant 8 : i32
    %168 = vector.broadcast %c8_i32 : i32 to vector<1x10xi32>
    %169 = arith.cmpi eq, %38, %168 : vector<1x10xi32>
    %cst_69 = arith.constant 0.000000e+00 : f32
    %170 = vector.shape_cast %167 : vector<1x1xf32> to vector<1x1xf32>
    %171 = vector.broadcast %170 : vector<1x1xf32> to vector<1x10xf32>
    %172 = vector.broadcast %cst_69 : f32 to vector<1x10xf32>
    %173 = arith.select %169, %171, %172 : vector<1x10xi1>, vector<1x10xf32>
    %174 = arith.addf %159, %173 : vector<1x10xf32>
    %c9 = arith.constant 9 : index
    %c0_70 = arith.constant 0 : index
    %c0_71 = arith.constant 0 : index
    %175 = vector.load %arg3[%c9, %c0_70, %c0_71] : memref<10x64x32xf32, #tpu.memory_space<vmem>>, vector<1x64x32xf32>
    %176 = vector.shape_cast %175 : vector<1x64x32xf32> to vector<64x32xf32>
    %177 = arith.mulf %37, %176 : vector<64x32xf32>
    %178 = vector.shape_cast %177 : vector<64x32xf32> to vector<1x64x32xf32>
    %cst_72 = arith.constant dense<0.000000e+00> : vector<1xf32>
    %179 = vector.multi_reduction <add>, %178, %cst_72 [1, 2] : vector<1x64x32xf32> to vector<1xf32>
    %180 = vector.shape_cast %179 : vector<1xf32> to vector<1x1x1xf32>
    %181 = vector.extract %180[0, 0, 0] : f32 from vector<1x1x1xf32>
    %182 = vector.broadcast %181 : f32 to vector<1x1xf32>
    %c9_i32 = arith.constant 9 : i32
    %183 = vector.broadcast %c9_i32 : i32 to vector<1x10xi32>
    %184 = arith.cmpi eq, %38, %183 : vector<1x10xi32>
    %cst_73 = arith.constant 0.000000e+00 : f32
    %185 = vector.shape_cast %182 : vector<1x1xf32> to vector<1x1xf32>
    %186 = vector.broadcast %185 : vector<1x1xf32> to vector<1x10xf32>
    %187 = vector.broadcast %cst_73 : f32 to vector<1x10xf32>
    %188 = arith.select %184, %186, %187 : vector<1x10xi1>, vector<1x10xf32>
    %189 = arith.addf %174, %188 : vector<1x10xf32>
    %c0_74 = arith.constant 0 : index
    %c0_75 = arith.constant 0 : index
    %190 = vector.load %arg5[%c0_74, %c0_75] : memref<1x10xf32, #tpu.memory_space<vmem>>, vector<1x10xf32>
    tpu.vector_store %arg5[%c0_74, %c0_75], %189 {strides = array<i32>} : memref<1x10xf32, #tpu.memory_space<vmem>>, vector<1x10xf32>,
    return
  }
}

</mosaic_0001>

<bundles_post_ra>
// kernel: cnn_forward.1
= control target key start
LH: loop header
LB: loop body
LE: loop exit
PB: predicated region body
PF: predicated region fallthrough
CT: control target
= control target key end

     0   :  { %vm159_vm0 = vcmask 1043456   ;;  %vm1335_vm1 = vmmov 1   ;;  %vm62_vm3 = vcmask 97280   ;;  %s2072_s0 = inlined_call_operand.vmem [shape: f32[256,12], index: 0, kind: input, shape index: {}]   ;;  %s2073_s1 = inlined_call_operand.vmem [shape: f32[12,32], index: 1, kind: input, shape index: {}]   ;;  %s2074_s2 = inlined_call_operand.vmem [shape: f32[1,32], index: 2, kind: input, shape index: {}]   ;;  %s2075_s3 = inlined_call_operand.vmem [shape: f32[10,64,32], index: 3, kind: input, shape index: {}]   ;;  %s2076_s4 = inlined_call_operand.vmem [shape: f32[1,10], index: 4, kind: input, shape index: {}]   ;;  %s2077_s5 = inlined_call_operand.hbm [shape: f32[1,10], index: 5, kind: output, shape index: {}]  }
   0x1   :  { %v53_v0 = vld [vmem:[%s2073_s1] sm:$0xff]  ;;  %v54_v1 = vld [vmem:[%s2073_s1 + $0x8] sm:$0xf]  ;;  %vm1282_vm2 = vmpackc.low %vm159_vm0, %vm1335_vm1 }
   0x2   :  { %v21_v2 = vld [vmem:[%s2072_s0] sm:$0xff]  ;;  %v1281_v3 = vpack.c.bf16 %v54_v1, %v53_v0  ;;  %v22_v5 = vld [vmem:[%s2072_s0 + $0x8] sm:$0xff]  ;;  %v23_v7 = vld [vmem:[%s2072_s0 + $0x10] sm:$0xff] }
   0x3   :  { %v37_v4 = vld [vmem:[%s2072_s0 + $0x80] sm:$0xff]  ;;  %1233 = vmatprep.mubr.msk.f32.mxu0 %vm62_vm3, %v21_v2  ;;  %v38_v6 = vld [vmem:[%s2072_s0 + $0x88] sm:$0xff]  ;;  %v39_v8 = vld [vmem:[%s2072_s0 + $0x90] sm:$0xff] }
   0x4   :  { %1257 = vmatprep.mubr.msk.f32.mxu1 %vm62_vm3, %v37_v4  ;;  %1283 = vmatprep.subr.msk.bf16.mxu0 %vm1282_vm2, %v1281_v3  ;;  %v24_v9 = vld [vmem:[%s2072_s0 + $0x18] sm:$0xff]  ;;  %v25_v11 = vld [vmem:[%s2072_s0 + $0x20] sm:$0xff] }
   0x5   :  { %1287 = vmatprep.subr.msk.bf16.mxu1 %vm1282_vm2, %v1281_v3  ;;  %1286 = vmatpush3.bf16.msk.msra.mxu0 %vm1282_vm2, %v1281_v3  ;;  %v40_v10 = vld [vmem:[%s2072_s0 + $0x98] sm:$0xff]  ;;  %v41_v12 = vld [vmem:[%s2072_s0 + $0xa0] sm:$0xff] }
   0x6   :  { %1288 = vmatpush3.bf16.msk.msra.mxu1 %vm1282_vm2, %v1281_v3 }
   0x8   :  { %1234 = vmatmul.mubr.msk.f32.vlgmr.msra.gmra.mrb[0].mxu0 %vm62_vm3, %v22_v5 }
   0x9   :  { %1258 = vmatmul.mubr.msk.f32.vlgmr.msra.gmra.mrb[0].mxu1 %vm62_vm3, %v38_v6  ;;  %1236 = vmatprep.mubr.msk.f32.mxu0 %vm62_vm3, %v23_v7 }
   0xa   :  { %1260 = vmatprep.mubr.msk.f32.mxu1 %vm62_vm3, %v39_v8 }
   0xc   :  { %1237 = vmatmul.mubr.msk.f32.gmra.mrb[2].mxu0 %vm62_vm3, %v24_v9 }
   0xd   :  { %1261 = vmatmul.mubr.msk.f32.gmra.mrb[2].mxu1 %vm62_vm3, %v40_v10 }
   0xe   :  { %10 = vsyncpa [#allocation5], 0  ;;  %1239 = vmatprep.mubr.msk.f32.mxu0 %vm62_vm3, %v25_v11  ;;  %1263 = vmatprep.mubr.msk.f32.mxu1 %vm62_vm3, %v41_v12  ;;  %v26_v13 = vld [vmem:[%s2072_s0 + $0x28] sm:$0xff]  ;;  %v27_v15 = vld [vmem:[%s2072_s0 + $0x30] sm:$0xff]  ;;  %vm420_vm4 = vcmask 261120   ;;  %vm580_vm5 = vcmask 260096  }
   0xf   :  { %v42_v14 = vld [vmem:[%s2072_s0 + $0xa8] sm:$0xff]  ;;  %v43_v16 = vld [vmem:[%s2072_s0 + $0xb0] sm:$0xff]  ;;  %v28_v17 = vld [vmem:[%s2072_s0 + $0x38] sm:$0xff]  ;;  %s1336_s10 = smov [#allocation4]   ;;  %vm1073_vm0 = vcmask 73728  }
  0x10   :  { %1240 = vmatmul.mubr.msk.f32.gmra.mrb[4].mxu0 %vm62_vm3, %v26_v13  ;;  %v44_v18 = vld [vmem:[%s2072_s0 + $0xb8] sm:$0xff]  ;;  %v29_v19 = vld [vmem:[%s2072_s0 + $0x40] sm:$0xff]  ;;  %v30_v21 = vld [vmem:[%s2072_s0 + $0x48] sm:$0xff]  ;;  %s1081_s11 = sshll.u32 %s1336_s10, 4  ;;  %s1082_s11 = int_to_ptr.vmem [resolvable:$true] %s1081_s11 }
  0x11   :  { %1264 = vmatmul.mubr.msk.f32.gmra.mrb[4].mxu1 %vm62_vm3, %v42_v14  ;;  %1242 = vmatprep.mubr.msk.f32.mxu0 %vm62_vm3, %v27_v15  ;;  %v45_v20 = vld [vmem:[%s2072_s0 + $0xc0] sm:$0xff]  ;;  %v46_v22 = vld [vmem:[%s2072_s0 + $0xc8] sm:$0xff]  ;;  %v31_v23 = vld [vmem:[%s2072_s0 + $0x50] sm:$0xff]  ;;  %s1311_s12 = scalar_lea.vmem %s1082_s11, 16  ;;  %s1315_s13 = scalar_lea.vmem %s1082_s11, 32 }
  0x12   :  { %1266 = vmatprep.mubr.msk.f32.mxu1 %vm62_vm3, %v43_v16  ;;  %v47_v24 = vld [vmem:[%s2072_s0 + $0xd0] sm:$0xff]  ;;  %v32_v25 = vld [vmem:[%s2072_s0 + $0x58] sm:$0xff]  ;;  %v33_v27 = vld [vmem:[%s2072_s0 + $0x60] sm:$0xff]  ;;  %p1312_p0 = scmp.ne.s32.totalorder %s1082_s11, %s1311_s12  ;;  %p1316_p1 = scmp.lt.s32.totalorder %s1082_s11, %s1082_s11 }
  0x13   :  { %v48_v26 = vld [vmem:[%s2072_s0 + $0xd8] sm:$0xff]  ;;  %v49_v28 = vld [vmem:[%s2072_s0 + $0xe0] sm:$0xff]  ;;  %v34_v29 = vld [vmem:[%s2072_s0 + $0x68] sm:$0xff]  ;;  %p1317_p2 = scmp.lt.s32.totalorder %s1315_s13, %s1311_s12 }
  0x14   :  { %1243 = vmatmul.mubr.msk.f32.gmra.mrb[6].mxu0 %vm62_vm3, %v28_v17  ;;  %v50_v30 = vld [vmem:[%s2072_s0 + $0xe8] sm:$0xff]  ;;  %v35_v31 = vld [vmem:[%s2072_s0 + $0x70] sm:$0xff]  ;;  %v36_v33 = vld [vmem:[%s2072_s0 + $0x78] sm:$0xff] }
  0x15   :  { %1267 = vmatmul.mubr.msk.f32.gmra.mrb[6].mxu1 %vm62_vm3, %v44_v18  ;;  %1245 = vmatprep.mubr.msk.f32.mxu0 %vm62_vm3, %v29_v19  ;;  %v51_v32 = vld [vmem:[%s2072_s0 + $0xf0] sm:$0xff]  ;;  %v52_v34 = vld [vmem:[%s2072_s0 + $0xf8] sm:$0xff]  ;;  %v1504_v35 = vld [vmem:[%s2074_s2] ss:$0 sm:$0xff]  ;;  %p1318_p3 = por %p1317_p2, %p1316_p1 }
  0x16   :  { %1269 = vmatprep.mubr.msk.f32.mxu1 %vm62_vm3, %v45_v20 }
  0x17   :  { %p1319_p4 = pnand %p1318_p3, %p1312_p0 }
  0x18   :  { %1246 = vmatmul.mubr.msk.f32.gmra.mrb[8].mxu0 %vm62_vm3, %v30_v21 }
  0x19   :  { %1270 = vmatmul.mubr.msk.f32.gmra.mrb[8].mxu1 %vm62_vm3, %v46_v22  ;;  %1248 = vmatprep.mubr.msk.f32.mxu0 %vm62_vm3, %v31_v23 }
  0x1a   :  { %1272 = vmatprep.mubr.msk.f32.mxu1 %vm62_vm3, %v47_v24 }
  0x1c   :  { %1249 = vmatmul.mubr.msk.f32.gmra.mrb[10].mxu0 %vm62_vm3, %v32_v25 }
  0x1d   :  { %1273 = vmatmul.mubr.msk.f32.gmra.mrb[10].mxu1 %vm62_vm3, %v48_v26  ;;  %1251 = vmatprep.mubr.msk.f32.mxu0 %vm62_vm3, %v33_v27 }
  0x1e   :  { %1275 = vmatprep.mubr.msk.f32.mxu1 %vm62_vm3, %v49_v28 }
  0x20   :  { %1252 = vmatmul.mubr.msk.f32.gmra.mrb[12].mxu0 %vm62_vm3, %v34_v29 }
  0x21   :  { %1276 = vmatmul.mubr.msk.f32.gmra.mrb[12].mxu1 %vm62_vm3, %v50_v30  ;;  %1254 = vmatprep.mubr.msk.f32.mxu0 %vm62_vm3, %v35_v31 }
  0x22   :  { %1278 = vmatprep.mubr.msk.f32.mxu1 %vm62_vm3, %v51_v32 }
  0x24   :  { %1255 = vmatmul.mubr.msk.f32.gmra.mrb[14].mxu0 %vm62_vm3, %v36_v33 }
  0x25   :  { %1279 = vmatmul.mubr.msk.f32.gmra.mrb[14].mxu1 %vm62_vm3, %v52_v34 }
  0xdb   :  { %v1235_v36 = vpop.f32.mrb[0].mxu0 }
  0xdc   :  { %v1259_v37 = vpop.f32.mrb[0].mxu1  ;;  %v235_v38 = vadd.f32 %v1235_v36, %v1504_v35  ;;  %v229_v39 = vpop.f32.mrb[1].mxu0 }
  0xdd   :  { %v315_v40 = vadd.f32 %v1259_v37, %v1504_v35  ;;  %v309_v41 = vpop.f32.mrb[1].mxu1  ;;  %v230_v42 = vadd.f32 %v1504_v35, %v229_v39 }
  0xde   :  { %v310_v43 = vadd.f32 %v1504_v35, %v309_v41  ;;  %v389_v44 = vmax.f32 %v235_v38, 0.0 }
  0xdf   :  { %v405_v45 = vmax.f32 %v315_v40, 0.0  ;;  %v388_v46 = vmax.f32 %v230_v42, 0.0  ;;  %v1238_v47 = vpop.f32.mrb[2].mxu0 }
  0xe0   :  { %v404_v48 = vmax.f32 %v310_v43, 0.0  ;;  %v1262_v49 = vpop.f32.mrb[2].mxu1  ;;  %422 = vst.msk [vmem:[#allocation2 + $0x8] sm:$0xff] %vm420_vm4, %v389_v44  ;;  %v245_v50 = vadd.f32 %v1238_v47, %v1504_v35  ;;  %v239_v51 = vpop.f32.mrb[3].mxu0 }
  0xe1   :  { %438 = vst.msk [vmem:[#allocation2 + $0x88] sm:$0xff] %vm420_vm4, %v405_v45  ;;  %v325_v52 = vadd.f32 %v1262_v49, %v1504_v35  ;;  %v319_v53 = vpop.f32.mrb[3].mxu1  ;;  %421 = vst.msk [vmem:[#allocation2] sm:$0xff] %vm420_vm4, %v388_v46  ;;  %v240_v54 = vadd.f32 %v1504_v35, %v239_v51 }
  0xe2   :  { %437 = vst.msk [vmem:[#allocation2 + $0x80] sm:$0xff] %vm420_vm4, %v404_v48  ;;  %v320_v55 = vadd.f32 %v1504_v35, %v319_v53  ;;  %v391_v56 = vmax.f32 %v245_v50, 0.0 }
  0xe3   :  { %v407_v57 = vmax.f32 %v325_v52, 0.0  ;;  %v390_v58 = vmax.f32 %v240_v54, 0.0  ;;  %v1241_v60 = vpop.f32.mrb[4].mxu0 }
  0xe4   :  { %v406_v59 = vmax.f32 %v320_v55, 0.0  ;;  %v1265_v61 = vpop.f32.mrb[4].mxu1  ;;  %424 = vst.msk [vmem:[#allocation2 + $0x18] sm:$0xff] %vm420_vm4, %v391_v56  ;;  %v255_v62 = vadd.f32 %v1241_v60, %v1504_v35  ;;  %v249_v0 = vpop.f32.mrb[5].mxu0 }
  0xe5   :  { %440 = vst.msk [vmem:[#allocation2 + $0x98] sm:$0xff] %vm420_vm4, %v407_v57  ;;  %v335_v63 = vadd.f32 %v1265_v61, %v1504_v35  ;;  %v329_v1 = vpop.f32.mrb[5].mxu1  ;;  %423 = vst.msk [vmem:[#allocation2 + $0x10] sm:$0xff] %vm420_vm4, %v390_v58  ;;  %v250_v2 = vadd.f32 %v1504_v35, %v249_v0 }
  0xe6   :  { %439 = vst.msk [vmem:[#allocation2 + $0x90] sm:$0xff] %vm420_vm4, %v406_v59  ;;  %v330_v3 = vadd.f32 %v1504_v35, %v329_v1  ;;  %v393_v4 = vmax.f32 %v255_v62, 0.0 }
  0xe7   :  { %v409_v5 = vmax.f32 %v335_v63, 0.0  ;;  %v392_v6 = vmax.f32 %v250_v2, 0.0  ;;  %v1244_v8 = vpop.f32.mrb[6].mxu0  ;;  %v454_v24 = vld [vmem:[#allocation2 + $0x8] sm:$0xff] }
  0xe8   :  { %v408_v7 = vmax.f32 %v330_v3, 0.0  ;;  %v1268_v9 = vpop.f32.mrb[6].mxu1  ;;  %v453_v10 = vld [vmem:[#allocation2] sm:$0xff]  ;;  %426 = vst.msk [vmem:[#allocation2 + $0x28] sm:$0xff] %vm420_vm4, %v393_v4  ;;  %v265_v13 = vadd.f32 %v1244_v8, %v1504_v35  ;;  %v259_v14 = vpop.f32.mrb[7].mxu0  ;;  %v470_v25 = vld [vmem:[#allocation2 + $0x88] sm:$0xff] }
  0xe9   :  { %v485_v11 = vld [vmem:[#allocation2 + $0x1] sm:$0xff]  ;;  %442 = vst.msk [vmem:[#allocation2 + $0xa8] sm:$0xff] %vm420_vm4, %v409_v5  ;;  %v345_v15 = vadd.f32 %v1268_v9, %v1504_v35  ;;  %v339_v16 = vpop.f32.mrb[7].mxu1  ;;  %425 = vst.msk [vmem:[#allocation2 + $0x20] sm:$0xff] %vm420_vm4, %v392_v6  ;;  %v260_v19 = vadd.f32 %v1504_v35, %v259_v14 }
  0xea   :  { %v469_v12 = vld [vmem:[#allocation2 + $0x80] sm:$0xff]  ;;  %v517_v17 = vmax.f32 %v453_v10, %v485_v11  ;;  %441 = vst.msk [vmem:[#allocation2 + $0xa0] sm:$0xff] %vm420_vm4, %v408_v7  ;;  %v340_v20 = vadd.f32 %v1504_v35, %v339_v16  ;;  %v395_v22 = vmax.f32 %v265_v13, 0.0 }
  0xeb   :  { %v501_v18 = vld [vmem:[#allocation2 + $0x81] sm:$0xff]  ;;  %v411_v23 = vmax.f32 %v345_v15, 0.0  ;;  %v394_v26 = vmax.f32 %v260_v19, 0.0  ;;  %v1247_v28 = vpop.f32.mrb[8].mxu0  ;;  %v456_v49 = vld [vmem:[#allocation2 + $0x18] sm:$0xff] }
  0xec   :  { %v533_v21 = vmax.f32 %v469_v12, %v501_v18  ;;  %549 = vst.msk [vmem:[#allocation3] sm:$0xff] %vm420_vm4, %v517_v17  ;;  %v410_v27 = vmax.f32 %v340_v20, 0.0  ;;  %v1271_v29 = vpop.f32.mrb[8].mxu1  ;;  %v455_v30 = vld [vmem:[#allocation2 + $0x10] sm:$0xff]  ;;  %428 = vst.msk [vmem:[#allocation2 + $0x38] sm:$0xff] %vm420_vm4, %v395_v22  ;;  %v275_v33 = vadd.f32 %v1247_v28, %v1504_v35  ;;  %v269_v36 = vpop.f32.mrb[9].mxu0 }
  0xed   :  { %v486_v31 = vld [vmem:[#allocation2 + $0x9] sm:$0xff]  ;;  %v487_v32 = vld [vmem:[#allocation2 + $0x11] sm:$0xff]  ;;  %444 = vst.msk [vmem:[#allocation2 + $0xb8] sm:$0xff] %vm420_vm4, %v411_v23  ;;  %v355_v34 = vadd.f32 %v1271_v29, %v1504_v35  ;;  %v349_v37 = vpop.f32.mrb[9].mxu1  ;;  %427 = vst.msk [vmem:[#allocation2 + $0x30] sm:$0xff] %vm420_vm4, %v394_v26  ;;  %v270_v43 = vadd.f32 %v1504_v35, %v269_v36 }
  0xee   :  { %565 = vst.msk [vmem:[#allocation3 + $0x80] sm:$0xff] %vm420_vm4, %v533_v21  ;;  %v518_v38 = vmax.f32 %v454_v24, %v486_v31  ;;  %v519_v39 = vmax.f32 %v455_v30, %v487_v32  ;;  %v471_v40 = vld [vmem:[#allocation2 + $0x90] sm:$0xff]  ;;  %443 = vst.msk [vmem:[#allocation2 + $0xb0] sm:$0xff] %vm420_vm4, %v410_v27  ;;  %v350_v44 = vadd.f32 %v1504_v35, %v349_v37  ;;  %v397_v47 = vmax.f32 %v275_v33, 0.0  ;;  %v472_v50 = vld [vmem:[#allocation2 + $0x98] sm:$0xff] }
  0xef   :  { %v502_v41 = vld [vmem:[#allocation2 + $0x89] sm:$0xff]  ;;  %v503_v42 = vld [vmem:[#allocation2 + $0x91] sm:$0xff]  ;;  %v413_v48 = vmax.f32 %v355_v34, 0.0  ;;  %v396_v51 = vmax.f32 %v270_v43, 0.0  ;;  %v1250_v53 = vpop.f32.mrb[10].mxu0 }
  0xf0   :  { %v534_v45 = vmax.f32 %v470_v25, %v502_v41  ;;  %v535_v46 = vmax.f32 %v471_v40, %v503_v42  ;;  %550 = vst.msk [vmem:[#allocation3 + $0x8] sm:$0xff] %vm420_vm4, %v518_v38  ;;  %551 = vst.msk [vmem:[#allocation3 + $0x10] sm:$0xff] %vm420_vm4, %v519_v39  ;;  %v412_v52 = vmax.f32 %v350_v44, 0.0  ;;  %v1274_v54 = vpop.f32.mrb[10].mxu1  ;;  %v457_v55 = vld [vmem:[#allocation2 + $0x20] sm:$0xff]  ;;  %v285_v58 = vadd.f32 %v1250_v53, %v1504_v35  ;;  %v279_v59 = vpop.f32.mrb[11].mxu0 }
  0xf1   :  { %v488_v56 = vld [vmem:[#allocation2 + $0x19] sm:$0xff]  ;;  %v489_v57 = vld [vmem:[#allocation2 + $0x21] sm:$0xff]  ;;  %430 = vst.msk [vmem:[#allocation2 + $0x48] sm:$0xff] %vm420_vm4, %v397_v47  ;;  %446 = vst.msk [vmem:[#allocation2 + $0xc8] sm:$0xff] %vm420_vm4, %v413_v48  ;;  %v365_v60 = vadd.f32 %v1274_v54, %v1504_v35  ;;  %v359_v61 = vpop.f32.mrb[11].mxu1  ;;  %v280_v3 = vadd.f32 %v1504_v35, %v279_v59 }
  0xf2   :  { %566 = vst.msk [vmem:[#allocation3 + $0x88] sm:$0xff] %vm420_vm4, %v534_v45  ;;  %567 = vst.msk [vmem:[#allocation3 + $0x90] sm:$0xff] %vm420_vm4, %v535_v46  ;;  %v520_v62 = vmax.f32 %v456_v49, %v488_v56  ;;  %v521_v63 = vmax.f32 %v457_v55, %v489_v57  ;;  %v473_v0 = vld [vmem:[#allocation2 + $0xa0] sm:$0xff]  ;;  %v360_v4 = vadd.f32 %v1504_v35, %v359_v61  ;;  %v399_v7 = vmax.f32 %v285_v58, 0.0  ;;  %v458_v9 = vld [vmem:[#allocation2 + $0x28] sm:$0xff] }
  0xf3   :  { %v504_v1 = vld [vmem:[#allocation2 + $0x99] sm:$0xff]  ;;  %v505_v2 = vld [vmem:[#allocation2 + $0xa1] sm:$0xff]  ;;  %429 = vst.msk [vmem:[#allocation2 + $0x40] sm:$0xff] %vm420_vm4, %v396_v51  ;;  %445 = vst.msk [vmem:[#allocation2 + $0xc0] sm:$0xff] %vm420_vm4, %v412_v52  ;;  %v415_v8 = vmax.f32 %v365_v60, 0.0  ;;  %v398_v11 = vmax.f32 %v280_v3, 0.0 }
  0xf4   :  { %v536_v5 = vmax.f32 %v472_v50, %v504_v1  ;;  %v537_v6 = vmax.f32 %v473_v0, %v505_v2  ;;  %v474_v10 = vld [vmem:[#allocation2 + $0xa8] sm:$0xff]  ;;  %552 = vst.msk [vmem:[#allocation3 + $0x18] sm:$0xff] %vm420_vm4, %v520_v62  ;;  %553 = vst.msk [vmem:[#allocation3 + $0x20] sm:$0xff] %vm420_vm4, %v521_v63  ;;  %v414_v12 = vmax.f32 %v360_v4, 0.0  ;;  %v1253_v13 = vpop.f32.mrb[12].mxu0  ;;  %v1277_v14 = vpop.f32.mrb[12].mxu1 }
  0xf5   :  { %v459_v15 = vld [vmem:[#allocation2 + $0x30] sm:$0xff]  ;;  %432 = vst.msk [vmem:[#allocation2 + $0x58] sm:$0xff] %vm420_vm4, %v399_v7  ;;  %448 = vst.msk [vmem:[#allocation2 + $0xd8] sm:$0xff] %vm420_vm4, %v415_v8  ;;  %v295_v18 = vadd.f32 %v1253_v13, %v1504_v35  ;;  %v375_v19 = vadd.f32 %v1277_v14, %v1504_v35  ;;  %v289_v20 = vpop.f32.mrb[13].mxu0  ;;  %v369_v21 = vpop.f32.mrb[13].mxu1  ;;  %v460_v33 = vld [vmem:[#allocation2 + $0x38] sm:$0xff] }
  0xf6   :  { %568 = vst.msk [vmem:[#allocation3 + $0x98] sm:$0xff] %vm420_vm4, %v536_v5  ;;  %569 = vst.msk [vmem:[#allocation3 + $0xa0] sm:$0xff] %vm420_vm4, %v537_v6  ;;  %v490_v16 = vld [vmem:[#allocation2 + $0x29] sm:$0xff]  ;;  %v491_v17 = vld [vmem:[#allocation2 + $0x31] sm:$0xff]  ;;  %v290_v27 = vadd.f32 %v1504_v35, %v289_v20  ;;  %v370_v28 = vadd.f32 %v1504_v35, %v369_v21 }
  0xf7   :  { %v522_v22 = vmax.f32 %v458_v9, %v490_v16  ;;  %v523_v23 = vmax.f32 %v459_v15, %v491_v17  ;;  %v475_v24 = vld [vmem:[#allocation2 + $0xb0] sm:$0xff]  ;;  %431 = vst.msk [vmem:[#allocation2 + $0x50] sm:$0xff] %vm420_vm4, %v398_v11  ;;  %447 = vst.msk [vmem:[#allocation2 + $0xd0] sm:$0xff] %vm420_vm4, %v414_v12  ;;  %v401_v31 = vmax.f32 %v295_v18, 0.0  ;;  %v417_v32 = vmax.f32 %v375_v19, 0.0  ;;  %v476_v34 = vld [vmem:[#allocation2 + $0xb8] sm:$0xff] }
  0xf8   :  { %v506_v25 = vld [vmem:[#allocation2 + $0xa9] sm:$0xff]  ;;  %v507_v26 = vld [vmem:[#allocation2 + $0xb1] sm:$0xff]  ;;  %v400_v36 = vmax.f32 %v290_v27, 0.0  ;;  %v416_v37 = vmax.f32 %v370_v28, 0.0  ;;  %v1256_v38 = vpop.f32.mrb[14].mxu0  ;;  %v1280_v39 = vpop.f32.mrb[14].mxu1 }
  0xf9   :  { %v538_v29 = vmax.f32 %v474_v10, %v506_v25  ;;  %v539_v30 = vmax.f32 %v475_v24, %v507_v26  ;;  %554 = vst.msk [vmem:[#allocation3 + $0x28] sm:$0xff] %vm420_vm4, %v522_v22  ;;  %555 = vst.msk [vmem:[#allocation3 + $0x30] sm:$0xff] %vm420_vm4, %v523_v23  ;;  %v305_v43 = vadd.f32 %v1256_v38, %v1504_v35  ;;  %v299_v44 = vpop.f32.mrb[15].mxu0  ;;  %v379_v46 = vpop.f32.mrb[15].mxu1  ;;  %v582_v47 = vld [vmem:[#allocation3] ss:$2 sm:$0xff] }
  0xfa   :  { %v461_v40 = vld [vmem:[#allocation2 + $0x40] sm:$0xff]  ;;  %434 = vst.msk [vmem:[#allocation2 + $0x68] sm:$0xff] %vm420_vm4, %v401_v31  ;;  %450 = vst.msk [vmem:[#allocation2 + $0xe8] sm:$0xff] %vm420_vm4, %v417_v32  ;;  %v385_v45 = vadd.f32 %v1280_v39, %v1504_v35  ;;  %v300_v53 = vadd.f32 %v1504_v35, %v299_v44  ;;  %v380_v54 = vadd.f32 %v1504_v35, %v379_v46  ;;  %v462_v0 = vld [vmem:[#allocation2 + $0x48] sm:$0xff] }
  0xfb   :  { %570 = vst.msk [vmem:[#allocation3 + $0xa8] sm:$0xff] %vm420_vm4, %v538_v29  ;;  %571 = vst.msk [vmem:[#allocation3 + $0xb0] sm:$0xff] %vm420_vm4, %v539_v30  ;;  %v492_v41 = vld [vmem:[#allocation2 + $0x39] sm:$0xff]  ;;  %v493_v42 = vld [vmem:[#allocation2 + $0x41] sm:$0xff]  ;;  %v403_v59 = vmax.f32 %v305_v43, 0.0 }
  0xfc   :  { %v524_v48 = vmax.f32 %v460_v33, %v492_v41  ;;  %v525_v49 = vmax.f32 %v461_v40, %v493_v42  ;;  %v477_v50 = vld [vmem:[#allocation2 + $0xc0] sm:$0xff]  ;;  %433 = vst.msk [vmem:[#allocation2 + $0x60] sm:$0xff] %vm420_vm4, %v400_v36  ;;  %449 = vst.msk [vmem:[#allocation2 + $0xe0] sm:$0xff] %vm420_vm4, %v416_v37  ;;  %v419_v60 = vmax.f32 %v385_v45, 0.0  ;;  %v584_v61 = vld [vmem:[#allocation3 + $0x10] ss:$2 sm:$0xff] }
  0xfd   :  { %v508_v51 = vld [vmem:[#allocation2 + $0xb9] sm:$0xff]  ;;  %v509_v52 = vld [vmem:[#allocation2 + $0xc1] sm:$0xff]  ;;  %v402_v1 = vmax.f32 %v300_v53, 0.0  ;;  %v418_v2 = vmax.f32 %v380_v54, 0.0  ;;  %v1591_v3 = vmax.f32 %v582_v47, %v584_v61  ;;  %436 = vst.msk [vmem:[#allocation2 + $0x78] sm:$0xff] %vm420_vm4, %v403_v59 }
  0xfe   :  { %v1131_v55 = vld [vmem:[%s2075_s3 + $0x80] sm:$0xff]  ;;  %v540_v57 = vmax.f32 %v476_v34, %v508_v51  ;;  %v541_v58 = vmax.f32 %v477_v50, %v509_v52  ;;  %v478_v35 = vld [vmem:[#allocation2 + $0xc8] sm:$0xff]  ;;  %556 = vst.msk [vmem:[#allocation3 + $0x38] sm:$0xff] %vm420_vm4, %v524_v48  ;;  %557 = vst.msk [vmem:[#allocation3 + $0x40] sm:$0xff] %vm420_vm4, %v525_v49 }
  0xff   :  { %v624_v56 = vld [vmem:[%s2075_s3] sm:$0xff]  ;;  %v604_v4 = vld [vmem:[#allocation3 + $0x90] ss:$2 sm:$0xff]  ;;  %452 = vst.msk [vmem:[#allocation2 + $0xf8] sm:$0xff] %vm420_vm4, %v419_v60  ;;  %435 = vst.msk [vmem:[#allocation2 + $0x70] sm:$0xff] %vm420_vm4, %v402_v1  ;;  %v722_v19 = vmul.f32 %v1131_v55, %v1591_v3 }
 0x100   :  { %v602_v62 = vld [vmem:[#allocation3 + $0x80] ss:$2 sm:$0xff]  ;;  %572 = vst.msk [vmem:[#allocation3 + $0xb8] sm:$0xff] %vm420_vm4, %v540_v57  ;;  %573 = vst.msk [vmem:[#allocation3 + $0xc0] sm:$0xff] %vm420_vm4, %v541_v58  ;;  %v463_v8 = vld [vmem:[#allocation2 + $0x50] sm:$0xff]  ;;  %v632_v20 = vmul.f32 %v624_v56, %v1591_v3 }
 0x101   :  { %v1135_v63 = vld [vmem:[%s2075_s3 + $0xa0] sm:$0xff]  ;;  %v494_v9 = vld [vmem:[#allocation2 + $0x49] sm:$0xff]  ;;  %v495_v10 = vld [vmem:[#allocation2 + $0x51] sm:$0xff]  ;;  %v1606_v11 = vmax.f32 %v602_v62, %v604_v4  ;;  %451 = vst.msk [vmem:[#allocation2 + $0xf0] sm:$0xff] %vm420_vm4, %v418_v2  ;;  %v1641_v49 = vsel %vm420_vm4, %v722_v19, 0.0 }
 0x102   :  { %v628_v5 = vld [vmem:[%s2075_s3 + $0x20] sm:$0xff]  ;;  %v526_v12 = vmax.f32 %v462_v0, %v494_v9  ;;  %v527_v13 = vmax.f32 %v463_v8, %v495_v10  ;;  %v479_v14 = vld [vmem:[#allocation2 + $0xd0] sm:$0xff]  ;;  %v464_v22 = vld [vmem:[#allocation2 + $0x58] sm:$0xff]  ;;  %v1644_v50 = vsel %vm420_vm4, %v632_v20, 0.0 }
 0x103   :  { %v1139_v6 = vld [vmem:[%s2075_s3 + $0xc0] sm:$0xff]  ;;  %v510_v15 = vld [vmem:[#allocation2 + $0xc9] sm:$0xff]  ;;  %v511_v16 = vld [vmem:[#allocation2 + $0xd1] sm:$0xff]  ;;  %v726_v24 = vmul.f32 %v1135_v63, %v1606_v11  ;;  %v636_v32 = vmul.f32 %v628_v5, %v1606_v11 }
 0x104   :  { %v1143_v7 = vld [vmem:[%s2075_s3 + $0xe0] sm:$0xff]  ;;  %v542_v17 = vmax.f32 %v478_v35, %v510_v15  ;;  %v543_v18 = vmax.f32 %v479_v14, %v511_v16  ;;  %558 = vst.msk [vmem:[#allocation3 + $0x48] sm:$0xff] %vm420_vm4, %v526_v12  ;;  %559 = vst.msk [vmem:[#allocation3 + $0x50] sm:$0xff] %vm420_vm4, %v527_v13  ;;  %v480_v23 = vld [vmem:[#allocation2 + $0xd8] sm:$0xff]  ;;  %v767_v33 = vmul.f32 %v1139_v6, %v1591_v3 }
 0x105   :  { %v1123_v21 = vld [vmem:[%s2075_s3 + $0x40] sm:$0xff]  ;;  %v1132_v30 = vld [vmem:[%s2075_s3 + $0x88] sm:$0xff]  ;;  %v771_v34 = vmul.f32 %v1143_v7, %v1606_v11  ;;  %v589_v47 = vld [vmem:[#allocation3 + $0x30] ss:$2 sm:$0xff]  ;;  %v1651_v55 = vsel %vm420_vm4, %v726_v24, 0.0  ;;  %v1667_v35 = vsel %vm420_vm4, %v636_v32, 0.0 }
 0x106   :  { %v1127_v25 = vld [vmem:[%s2075_s3 + $0x60] sm:$0xff]  ;;  %574 = vst.msk [vmem:[#allocation3 + $0xc8] sm:$0xff] %vm420_vm4, %v542_v17  ;;  %575 = vst.msk [vmem:[#allocation3 + $0xd0] sm:$0xff] %vm420_vm4, %v543_v18  ;;  %v625_v31 = vld [vmem:[%s2075_s3 + $0x8] sm:$0xff]  ;;  %v677_v56 = vmul.f32 %v1123_v21, %v1591_v3  ;;  %v775_v1 = vsel %vm420_vm4, %v767_v33, 0.0 }
 0x107   :  { %v465_v26 = vld [vmem:[#allocation2 + $0x60] sm:$0xff]  ;;  %v1632_v36 = vld [vmem:[#allocation2 + $0xe8] sm:$0xff]  ;;  %v468_v51 = vld [vmem:[#allocation2 + $0x78] sm:$0xff]  ;;  %v681_v57 = vmul.f32 %v1127_v25, %v1606_v11  ;;  %v1671_v2 = vsel %vm420_vm4, %v771_v34, 0.0 }
 0x108   :  { %v496_v27 = vld [vmem:[#allocation2 + $0x59] sm:$0xff]  ;;  %v497_v28 = vld [vmem:[#allocation2 + $0x61] sm:$0xff]  ;;  %v467_v60 = vld [vmem:[#allocation2 + $0x70] sm:$0xff] }
 0x109   :  { %v587_v29 = vld [vmem:[#allocation3 + $0x20] ss:$2 sm:$0xff]  ;;  %v528_v37 = vmax.f32 %v464_v22, %v496_v27  ;;  %v529_v38 = vmax.f32 %v465_v26, %v497_v28  ;;  %v484_v53 = vld [vmem:[#allocation2 + $0xf8] sm:$0x7f]  ;;  %v483_v8 = vld [vmem:[#allocation2 + $0xf0] sm:$0xff]  ;;  %v1694_v24 = vsel %vm420_vm4, %v681_v57, 0.0 }
 0x10a   :  { %v481_v39 = vld [vmem:[#allocation2 + $0xe0] sm:$0xff]  ;;  %v1140_v42 = vld [vmem:[%s2075_s3 + $0xc8] sm:$0xff]  ;;  %v1648_v54 = vmax.f32 %v587_v29, %v589_v47  ;;  %v499_v62 = vld [vmem:[#allocation2 + $0x71] sm:$0xff] }
 0x10b   :  { %v512_v40 = vld [vmem:[#allocation2 + $0xd9] sm:$0xff]  ;;  %v513_v41 = vld [vmem:[#allocation2 + $0xe1] sm:$0xff]  ;;  %560 = vst.msk [vmem:[#allocation3 + $0x58] sm:$0xff] %vm420_vm4, %v528_v37  ;;  %561 = vst.msk [vmem:[#allocation3 + $0x60] sm:$0xff] %vm420_vm4, %v529_v38  ;;  %v531_v6 = vmax.f32 %v467_v60, %v499_v62 }
 0x10c   :  { %v1124_v43 = vld [vmem:[%s2075_s3 + $0x48] sm:$0xff]  ;;  %v544_v45 = vmax.f32 %v480_v23, %v512_v40  ;;  %v545_v46 = vmax.f32 %v481_v39, %v513_v41  ;;  %v500_v52 = vld [vmem:[#allocation2 + $0x79] sm:$0xff]  ;;  %v723_v10 = vmul.f32 %v1132_v30, %v1648_v54  ;;  %v633_v12 = vmul.f32 %v625_v31, %v1648_v54  ;;  %v515_v14 = vld [vmem:[#allocation2 + $0xf1] sm:$0xff] }
 0x10d   :  { %v466_v44 = vld [vmem:[#allocation2 + $0x68] sm:$0xff]  ;;  %v1155_v58 = vld [vmem:[%s2075_s3 + $0x140] sm:$0xff]  ;;  %v532_v59 = vmax.f32 %v468_v51, %v500_v52  ;;  %v516_v7 = vld [vmem:[#allocation2 + $0xf9] sm:$0x7f]  ;;  %v768_v18 = vmul.f32 %v1140_v42, %v1648_v54  ;;  %v678_v19 = vmul.f32 %v1124_v43, %v1648_v54  ;;  %563 = vst.msk [vmem:[#allocation3 + $0x70] sm:$0xff] %vm420_vm4, %v531_v6  ;;  %v547_v20 = vmax.f32 %v483_v8, %v515_v14 }
 0x10e   :  { %v607_v48 = vld [vmem:[#allocation3 + $0xa0] ss:$2 sm:$0xff]  ;;  %576 = vst.msk [vmem:[#allocation3 + $0xd8] sm:$0xff] %vm420_vm4, %v544_v45  ;;  %577 = vst.msk [vmem:[#allocation3 + $0xe0] sm:$0xff] %vm420_vm4, %v545_v46  ;;  %v548_v13 = vmax.f32 %v484_v53, %v516_v7  ;;  %v609_v16 = vld [vmem:[#allocation3 + $0xb0] ss:$2 sm:$0xff]  ;;  %v857_v31 = vmul.f32 %v1155_v58, %v1591_v3 }
 0x10f   :  { %v498_v61 = vld [vmem:[#allocation2 + $0x69] sm:$0xff]  ;;  %v1159_v4 = vld [vmem:[%s2075_s3 + $0x160] sm:$0xff]  ;;  %564 = vst.msk [vmem:[#allocation3 + $0x78] sm:$0xff] %vm420_vm4, %v532_v59  ;;  %v1687_v21 = vmax.f32 %v607_v48, %v609_v16  ;;  %v685_v23 = vsel %vm420_vm4, %v677_v56, 0.0  ;;  %v731_v27 = vsel %vm420_vm4, %v723_v10, 0.0  ;;  %v641_v28 = vsel %vm420_vm4, %v633_v12, 0.0 }
 0x110   :  { %v1136_v63 = vld [vmem:[%s2075_s3 + $0xa8] sm:$0xff]  ;;  %v530_v5 = vmax.f32 %v466_v44, %v498_v61  ;;  %v1147_v25 = vld [vmem:[%s2075_s3 + $0x100] sm:$0xff]  ;;  %581 = vst.msk [vmem:[#allocation3 + $0xf8] sm:$0x7f] %vm580_vm5, %v548_v13  ;;  %v776_v29 = vsel %vm420_vm4, %v768_v18, 0.0  ;;  %v1133_v33 = vld [vmem:[%s2075_s3 + $0x90] sm:$0xff]  ;;  %v1722_v39 = vmul.f32 %v1159_v4, %v1606_v11  ;;  %v732_v51 = vadd.f32 %v731_v27, %v1641_v49 }
 0x111   :  { %v629_v0 = vld [vmem:[%s2075_s3 + $0x28] sm:$0xff]  ;;  %v1151_v26 = vld [vmem:[%s2075_s3 + $0x120] sm:$0xff]  ;;  %579 = vst.msk [vmem:[#allocation3 + $0xf0] sm:$0xff] %vm420_vm4, %v547_v20  ;;  %v727_v34 = vmul.f32 %v1136_v63, %v1687_v21  ;;  %v686_v38 = vsel %vm420_vm4, %v678_v19, 0.0  ;;  %v1141_v42 = vld [vmem:[%s2075_s3 + $0xd0] sm:$0xff]  ;;  %v1730_v45 = vmul.f32 %v1147_v25, %v1591_v3  ;;  %v642_v52 = vadd.f32 %v641_v28, %v1644_v50 }
 0x112   :  { %v514_v9 = vld [vmem:[#allocation2 + $0xe9] sm:$0xff]  ;;  %562 = vst.msk [vmem:[#allocation3 + $0x68] sm:$0xff] %vm420_vm4, %v530_v5  ;;  %v637_v37 = vmul.f32 %v629_v0, %v1687_v21  ;;  %v1733_v46 = vmul.f32 %v1151_v26, %v1606_v11  ;;  %v777_v53 = vadd.f32 %v776_v29, %v775_v1  ;;  %v1134_v59 = vld [vmem:[%s2075_s3 + $0x98] sm:$0xff]  ;;  %v687_v60 = vadd.f32 %v686_v38, %v685_v23 }
 0x113   :  { %v546_v15 = vmax.f32 %v1632_v36, %v514_v9  ;;  %v1144_v17 = vld [vmem:[%s2075_s3 + $0xe8] sm:$0xff]  ;;  %v626_v36 = vld [vmem:[%s2075_s3 + $0x10] sm:$0xff]  ;;  %v1754_v50 = vsel %vm420_vm4, %v727_v34, 0.0  ;;  %v627_v63 = vld [vmem:[%s2075_s3 + $0x18] sm:$0xff]  ;;  %v865_v26 = vsel %vm420_vm4, %v857_v31, 0.0 }
 0x114   :  { %v1128_v22 = vld [vmem:[%s2075_s3 + $0x68] sm:$0xff]  ;;  %v594_v41 = vld [vmem:[#allocation3 + $0x50] ss:$2 sm:$0xff]  ;;  %v772_v43 = vmul.f32 %v1144_v17, %v1687_v21  ;;  %v649_v4 = vsel %vm420_vm4, %v637_v37, 0.0 }
 0x115   :  { %578 = vst.msk [vmem:[#allocation3 + $0xe8] sm:$0xff] %vm420_vm4, %v546_v15  ;;  %v1156_v30 = vld [vmem:[%s2075_s3 + $0x148] sm:$0xff]  ;;  %v682_v44 = vmul.f32 %v1128_v22, %v1687_v21  ;;  %v614_v48 = vld [vmem:[#allocation3 + $0xd0] ss:$2 sm:$0xff] }
 0x116   :  { %v612_v32 = vld [vmem:[#allocation3 + $0xc0] ss:$2 sm:$0xff]  ;;  %v1125_v56 = vld [vmem:[%s2075_s3 + $0x50] sm:$0xff]  ;;  %v858_v61 = vmul.f32 %v1156_v30, %v1648_v54  ;;  %v1142_v5 = vld [vmem:[%s2075_s3 + $0xd8] sm:$0xff]  ;;  %v784_v9 = vsel %vm420_vm4, %v772_v43, 0.0 }
 0x117   :  { %v592_v40 = vld [vmem:[#allocation3 + $0x40] ss:$2 sm:$0xff]  ;;  %v1745_v58 = vmax.f32 %v612_v32, %v614_v48  ;;  %v1137_v49 = vld [vmem:[%s2075_s3 + $0xb0] sm:$0xff]  ;;  %v1773_v12 = vsel %vm420_vm4, %v682_v44, 0.0  ;;  %v1126_v25 = vld [vmem:[%s2075_s3 + $0x58] sm:$0xff] }
 0x118   :  { %v1735_v47 = vmax.f32 %v592_v40, %v594_v41  ;;  %v1160_v57 = vld [vmem:[%s2075_s3 + $0x168] sm:$0xff]  ;;  %v630_v0 = vld [vmem:[%s2075_s3 + $0x30] sm:$0xff]  ;;  %v866_v27 = vsel %vm420_vm4, %v858_v61, 0.0  ;;  %v1138_v34 = vld [vmem:[%s2075_s3 + $0xb8] sm:$0xff] }
 0x119   :  { %v597_v7 = vld [vmem:[#allocation3 + $0x60] ss:$2 sm:$0xff]  ;;  %v599_v8 = vld [vmem:[#allocation3 + $0x70] ss:$2 sm:$0xff]  ;;  %v1776_v13 = vmul.f32 %v1160_v57, %v1687_v21  ;;  %v728_v22 = vmul.f32 %v1137_v49, %v1745_v58  ;;  %v638_v23 = vmul.f32 %v630_v0, %v1745_v58 }
 0x11a   :  { %v724_v62 = vmul.f32 %v1133_v33, %v1735_v47  ;;  %v634_v1 = vmul.f32 %v626_v36, %v1735_v47  ;;  %v769_v6 = vmul.f32 %v1141_v42, %v1735_v47  ;;  %v679_v10 = vmul.f32 %v1125_v56, %v1735_v47  ;;  %v1145_v18 = vld [vmem:[%s2075_s3 + $0xf0] sm:$0xff]  ;;  %v631_v48 = vld [vmem:[%s2075_s3 + $0x38] sm:$0xff] }
 0x11b   :  { %v1778_v14 = vmax.f32 %v597_v7, %v599_v8  ;;  %v619_v20 = vld [vmem:[#allocation3 + $0xf0] ss:$2 sm:$0xff]  ;;  %v773_v37 = vmul.f32 %v1145_v18, %v1745_v58  ;;  %v651_v49 = vsel %vm420_vm4, %v638_v23, 0.0 }
 0x11c   :  { %v617_v15 = vld [vmem:[#allocation3 + $0xe0] ss:$2 sm:$0xff]  ;;  %v733_v16 = vsel %vm420_vm4, %v724_v62, 0.0  ;;  %v643_v17 = vsel %vm420_vm4, %v634_v1, 0.0  ;;  %v778_v19 = vsel %vm420_vm4, %v769_v6, 0.0  ;;  %v1129_v33 = vld [vmem:[%s2075_s3 + $0x70] sm:$0xff] }
 0x11d   :  { %v1793_v28 = vmax.f32 %v617_v15, %v619_v20  ;;  %v725_v29 = vmul.f32 %v1134_v59, %v1778_v14  ;;  %v635_v30 = vmul.f32 %v627_v63, %v1778_v14  ;;  %v770_v32 = vmul.f32 %v1142_v5, %v1778_v14  ;;  %v1157_v62 = vld [vmem:[%s2075_s3 + $0x150] sm:$0xff]  ;;  %v1130_v5 = vld [vmem:[%s2075_s3 + $0x78] sm:$0xff] }
 0x11e   :  { %v734_v36 = vadd.f32 %v733_v16, %v732_v51  ;;  %v644_v31 = vadd.f32 %v643_v17, %v642_v52  ;;  %v779_v38 = vadd.f32 %v778_v19, %v777_v53  ;;  %v680_v42 = vmul.f32 %v1126_v25, %v1778_v14  ;;  %v1146_v51 = vld [vmem:[%s2075_s3 + $0xf8] sm:$0xff] }
 0x11f   :  { %v735_v40 = vsel %vm420_vm4, %v725_v29, 0.0  ;;  %v645_v41 = vsel %vm420_vm4, %v635_v30, 0.0  ;;  %v688_v43 = vsel %vm420_vm4, %v679_v10, 0.0  ;;  %v780_v52 = vsel %vm420_vm4, %v770_v32, 0.0  ;;  %v1158_v7 = vld [vmem:[%s2075_s3 + $0x158] sm:$0xff] }
 0x120   :  { %v736_v44 = vadd.f32 %v735_v40, %v734_v36  ;;  %v646_v56 = vadd.f32 %v645_v41, %v644_v31  ;;  %v683_v53 = vmul.f32 %v1129_v33, %v1745_v58  ;;  %v729_v57 = vmul.f32 %v1138_v34, %v1793_v28 }
 0x121   :  { %v741_v59 = vsel %vm420_vm4, %v728_v22, 0.0  ;;  %v781_v61 = vadd.f32 %v780_v52, %v779_v38  ;;  %v786_v1 = vsel %vm420_vm4, %v773_v37, 0.0  ;;  %v689_v6 = vadd.f32 %v688_v43, %v687_v60 }
 0x122   :  { %v738_v63 = vadd.f32 %v1651_v55, %v736_v44  ;;  %v648_v0 = vadd.f32 %v1667_v35, %v646_v56  ;;  %v639_v8 = vmul.f32 %v631_v48, %v1793_v28  ;;  %v774_v10 = vmul.f32 %v1146_v51, %v1793_v28  ;;  %v1171_v56 = vld [vmem:[%s2075_s3 + $0x1c0] sm:$0xff] }
 0x123   :  { %v783_v15 = vadd.f32 %v1671_v2, %v781_v61  ;;  %v690_v55 = vsel %vm420_vm4, %v680_v42, 0.0  ;;  %v859_v18 = vmul.f32 %v1157_v62, %v1735_v47  ;;  %v743_v60 = vsel %vm420_vm4, %v729_v57, 0.0  ;;  %v1161_v2 = vld [vmem:[%s2075_s3 + $0x170] sm:$0xff] }
 0x124   :  { %v740_v35 = vadd.f32 %v1754_v50, %v738_v63  ;;  %v650_v16 = vadd.f32 %v649_v4, %v648_v0  ;;  %v691_v17 = vadd.f32 %v690_v55, %v689_v6  ;;  %v684_v20 = vmul.f32 %v1130_v5, %v1793_v28  ;;  %v1162_v50 = vld [vmem:[%s2075_s3 + $0x178] sm:$0xff]  ;;  %v1172_v0 = vld [vmem:[%s2075_s3 + $0x1c8] sm:$0xff] }
 0x125   :  { %v785_v19 = vadd.f32 %v784_v9, %v783_v15  ;;  %v860_v22 = vmul.f32 %v1158_v7, %v1778_v14  ;;  %v867_v4 = vadd.f32 %v866_v27, %v865_v26  ;;  %v653_v30 = vsel %vm420_vm4, %v639_v8, 0.0  ;;  %v1149_v26 = vld [vmem:[%s2075_s3 + $0x110] sm:$0xff]  ;;  %v1150_v27 = vld [vmem:[%s2075_s3 + $0x118] sm:$0xff] }
 0x126   :  { %v742_v23 = vadd.f32 %v741_v59, %v740_v35  ;;  %v652_v25 = vadd.f32 %v651_v49, %v650_v16  ;;  %v693_v29 = vadd.f32 %v1694_v24, %v691_v17  ;;  %v868_v32 = vsel %vm420_vm4, %v859_v18, 0.0  ;;  %v1148_v24 = vld [vmem:[%s2075_s3 + $0x108] sm:$0xff]  ;;  %v1154_v6 = vld [vmem:[%s2075_s3 + $0x138] sm:$0xff]  ;;  %v1175_v17 = vld [vmem:[%s2075_s3 + $0x1e0] sm:$0xff] }
 0x127   :  { %v787_v9 = vadd.f32 %v786_v1, %v785_v19  ;;  %v870_v33 = vsel %vm420_vm4, %v860_v22, 0.0  ;;  %v869_v37 = vadd.f32 %v868_v32, %v867_v4  ;;  %v788_v38 = vsel %vm420_vm4, %v774_v10, 0.0  ;;  %v1174_v1 = vld [vmem:[%s2075_s3 + $0x1d8] sm:$0xff]  ;;  %v1164_v32 = vld [vmem:[%s2075_s3 + $0x188] sm:$0xff] }
 0x128   :  { %v744_v34 = vadd.f32 %v743_v60, %v742_v23  ;;  %v654_v36 = vadd.f32 %v653_v30, %v652_v25  ;;  %v695_v31 = vadd.f32 %v1773_v12, %v693_v29  ;;  %v696_v40 = vsel %vm420_vm4, %v683_v53, 0.0  ;;  %v1152_v53 = vld [vmem:[%s2075_s3 + $0x128] sm:$0xff] }
 0x129   :  { %v863_v41 = vmul.f32 %v1161_v2, %v1745_v58  ;;  %v864_v42 = vmul.f32 %v1162_v50, %v1793_v28  ;;  %v698_v43 = vsel %vm420_vm4, %v684_v20, 0.0  ;;  %v871_v44 = vadd.f32 %v870_v33, %v869_v37  ;;  %v1176_v29 = vld [vmem:[%s2075_s3 + $0x1e8] sm:$0xff]  ;;  %v1165_v33 = vld [vmem:[%s2075_s3 + $0x190] sm:$0xff]  ;;  %v1166_v37 = vld [vmem:[%s2075_s3 + $0x198] sm:$0xff] }
 0x12a   :  { %745 = vadd.xlane.f32.xlu1 %v744_v34  ;;  %655 = vadd.xlane.f32.xlu0 %v654_v36  ;;  %v697_v12 = vadd.f32 %v696_v40, %v695_v31  ;;  %v813_v48 = vmul.f32 %v1148_v24, %v1648_v54  ;;  %v789_v51 = vadd.f32 %v788_v38, %v787_v9  ;;  %v872_v52 = vsel %vm420_vm4, %v1722_v39, 0.0  ;;  %v1173_v39 = vld [vmem:[%s2075_s3 + $0x1d0] sm:$0xff]  ;;  %v1163_v9 = vld [vmem:[%s2075_s3 + $0x180] sm:$0xff]  ;;  %v1178_v40 = vld [vmem:[%s2075_s3 + $0x1f8] sm:$0xff] }
 0x12b   :  { %v814_v57 = vmul.f32 %v1149_v26, %v1735_v47  ;;  %v815_v59 = vmul.f32 %v1150_v27, %v1778_v14  ;;  %v873_v61 = vadd.f32 %v872_v52, %v871_v44  ;;  %v820_v62 = vsel %vm420_vm4, %v1730_v45, 0.0  ;;  %v1153_v45 = vld [vmem:[%s2075_s3 + $0x130] sm:$0xff]  ;;  %v1167_v52 = vld [vmem:[%s2075_s3 + $0x1a0] sm:$0xff] }
 0x12c   :  { %v699_v49 = vadd.f32 %v698_v43, %v697_v12  ;;  %v821_v63 = vsel %vm420_vm4, %v813_v48, 0.0  ;;  %v874_v5 = vsel %vm420_vm4, %v1776_v13, 0.0  ;;  %v947_v10 = vmul.f32 %v1171_v56, %v1591_v3  ;;  %v1177_v38 = vld [vmem:[%s2075_s3 + $0x1f0] sm:$0xff] }
 0x12d   :  { %v822_v7 = vadd.f32 %v821_v63, %v820_v62  ;;  %v823_v8 = vsel %vm420_vm4, %v814_v57, 0.0  ;;  %v875_v15 = vadd.f32 %v874_v5, %v873_v61  ;;  %v876_v55 = vsel %vm420_vm4, %v863_v41, 0.0  ;;  %v1168_v62 = vld [vmem:[%s2075_s3 + $0x1a8] sm:$0xff]  ;;  %v1187_v63 = vld [vmem:[%s2075_s3 + $0x240] sm:$0xff] }
 0x12e   :  { %790 = vadd.xlane.f32.xlu1 %v789_v51  ;;  %700 = vadd.xlane.f32.xlu0 %v699_v49  ;;  %v817_v13 = vmul.f32 %v1152_v53, %v1687_v21  ;;  %v825_v35 = vsel %vm420_vm4, %v815_v59, 0.0  ;;  %v948_v18 = vmul.f32 %v1172_v0, %v1648_v54  ;;  %v949_v60 = vmul.f32 %v1173_v39, %v1735_v47 }
 0x12f   :  { %v824_v16 = vadd.f32 %v823_v8, %v822_v7  ;;  %v950_v19 = vmul.f32 %v1174_v1, %v1778_v14  ;;  %v877_v20 = vadd.f32 %v876_v55, %v875_v15  ;;  %v878_v22 = vsel %vm420_vm4, %v864_v42, 0.0  ;;  %v1190_v55 = vld [vmem:[%s2075_s3 + $0x258] sm:$0xff] }
 0x130   :  { %v818_v23 = vmul.f32 %v1153_v45, %v1745_v58  ;;  %v819_v25 = vmul.f32 %v1154_v6, %v1793_v28  ;;  %v955_v50 = vsel %vm420_vm4, %v947_v10, 0.0  ;;  %v956_v4 = vsel %vm420_vm4, %v948_v18, 0.0  ;;  %v1188_v45 = vld [vmem:[%s2075_s3 + $0x248] sm:$0xff]  ;;  %v1189_v6 = vld [vmem:[%s2075_s3 + $0x250] sm:$0xff] }
 0x131   :  { %v826_v2 = vadd.f32 %v825_v35, %v824_v16  ;;  %v958_v30 = vsel %vm420_vm4, %v949_v60, 0.0  ;;  %v879_v24 = vadd.f32 %v878_v22, %v877_v20  ;;  %v827_v34 = vsel %vm420_vm4, %v1733_v46, 0.0  ;;  %v1169_v35 = vld [vmem:[%s2075_s3 + $0x1b0] sm:$0xff]  ;;  %v1170_v16 = vld [vmem:[%s2075_s3 + $0x1b8] sm:$0xff] }
 0x132   :  { %v951_v36 = vmul.f32 %v1175_v17, %v1606_v11  ;;  %v957_v31 = vadd.f32 %v956_v4, %v955_v50  ;;  %v829_v27 = vsel %vm420_vm4, %v817_v13, 0.0  ;;  %v952_v46 = vmul.f32 %v1176_v29, %v1687_v21 }
 0x133   :  { %v828_v26 = vadd.f32 %v827_v34, %v826_v2  ;;  %v960_v41 = vsel %vm420_vm4, %v950_v19, 0.0  ;;  %880 = vadd.xlane.f32.xlu1 %v879_v24  ;;  %v902_v12 = vmul.f32 %v1163_v9, %v1591_v3  ;;  %v903_v43 = vmul.f32 %v1164_v32, %v1648_v54  ;;  %v1191_v32 = vld [vmem:[%s2075_s3 + $0x260] sm:$0xff]  ;;  %v1180_v24 = vld [vmem:[%s2075_s3 + $0x208] sm:$0xff] }
 0x134   :  { %v959_v42 = vadd.f32 %v958_v30, %v957_v31  ;;  %v904_v44 = vmul.f32 %v1165_v33, %v1735_v47  ;;  %v831_v56 = vsel %vm420_vm4, %v818_v23, 0.0  ;;  %v833_v51 = vsel %vm420_vm4, %v819_v25, 0.0  ;;  %v1179_v33 = vld [vmem:[%s2075_s3 + $0x200] sm:$0xff] }
 0x135   :  { %v830_v48 = vadd.f32 %v829_v27, %v828_v26  ;;  %v905_v53 = vmul.f32 %v1166_v37, %v1778_v14  ;;  %v953_v57 = vmul.f32 %v1177_v38, %v1745_v58  ;;  %v954_v59 = vmul.f32 %v1178_v40, %v1793_v28  ;;  %v1181_v26 = vld [vmem:[%s2075_s3 + $0x210] sm:$0xff]  ;;  %v1182_v27 = vld [vmem:[%s2075_s3 + $0x218] sm:$0xff] }
 0x136   :  { %v961_v49 = vadd.f32 %v960_v41, %v959_v42  ;;  %v962_v61 = vsel %vm420_vm4, %v951_v36, 0.0  ;;  %v910_v39 = vsel %vm420_vm4, %v902_v12, 0.0  ;;  %v911_v1 = vsel %vm420_vm4, %v903_v43, 0.0  ;;  %v1192_v41 = vld [vmem:[%s2075_s3 + $0x268] sm:$0xff] }
 0x137   :  { %v832_v0 = vadd.f32 %v831_v56, %v830_v48  ;;  %v913_v5 = vsel %vm420_vm4, %v904_v44, 0.0  ;;  %v964_v8 = vsel %vm420_vm4, %v952_v46, 0.0  ;;  %v906_v10 = vmul.f32 %v1167_v52, %v1606_v11 }
 0x138   :  { %v963_v7 = vadd.f32 %v962_v61, %v961_v49  ;;  %v912_v15 = vadd.f32 %v911_v1, %v910_v39  ;;  %v907_v17 = vmul.f32 %v1168_v62, %v1687_v21  ;;  %v915_v18 = vsel %vm420_vm4, %v905_v53, 0.0  ;;  %v1194_v62 = vld [vmem:[%s2075_s3 + $0x278] sm:$0xff]  ;;  %v1184_v1 = vld [vmem:[%s2075_s3 + $0x228] sm:$0xff] }
 0x139   :  { %v834_v13 = vadd.f32 %v833_v51, %v832_v0  ;;  %v1037_v60 = vmul.f32 %v1187_v63, %v1591_v3  ;;  %v1038_v22 = vmul.f32 %v1188_v45, %v1648_v54  ;;  %v1039_v23 = vmul.f32 %v1189_v6, %v1735_v47  ;;  %v1193_v51 = vld [vmem:[%s2075_s3 + $0x270] sm:$0xff] }
 0x13a   :  { %v965_v19 = vadd.f32 %v964_v8, %v963_v7  ;;  %v914_v20 = vadd.f32 %v913_v5, %v912_v15  ;;  %v966_v25 = vsel %vm420_vm4, %v953_v57, 0.0  ;;  %v968_v29 = vsel %vm420_vm4, %v954_v59, 0.0 }
 0x13b   :  { %835 = vadd.xlane.f32.xlu0 %v834_v13  ;;  %v1040_v2 = vmul.f32 %v1190_v55, %v1778_v14  ;;  %v908_v4 = vmul.f32 %v1169_v35, %v1745_v58  ;;  %v909_v30 = vmul.f32 %v1170_v16, %v1793_v28  ;;  %v917_v34 = vsel %vm420_vm4, %v906_v10, 0.0  ;;  %v1185_v13 = vld [vmem:[%s2075_s3 + $0x230] sm:$0xff] }
 0x13c   :  { %v967_v50 = vadd.f32 %v966_v25, %v965_v19  ;;  %v916_v9 = vadd.f32 %v915_v18, %v914_v20  ;;  %v1045_v36 = vsel %vm420_vm4, %v1037_v60, 0.0  ;;  %v1046_v31 = vsel %vm420_vm4, %v1038_v22, 0.0 }
 0x13d   :  { %v1048_v37 = vsel %vm420_vm4, %v1039_v23, 0.0  ;;  %v919_v46 = vsel %vm420_vm4, %v907_v17, 0.0  ;;  %v1047_v42 = vadd.f32 %v1046_v31, %v1045_v36  ;;  %v1041_v12 = vmul.f32 %v1191_v32, %v1606_v11 }
 0x13e   :  { %v969_v38 = vadd.f32 %v968_v29, %v967_v50  ;;  %v918_v40 = vadd.f32 %v917_v34, %v916_v9  ;;  %v1050_v43 = vsel %vm420_vm4, %v1040_v2, 0.0  ;;  %v992_v44 = vmul.f32 %v1179_v33, %v1591_v3  ;;  %v1183_v3 = vld [vmem:[%s2075_s3 + $0x220] sm:$0xff] }
 0x13f   :  { %v993_v48 = vmul.f32 %v1180_v24, %v1648_v54  ;;  %v1049_v52 = vadd.f32 %v1048_v37, %v1047_v42  ;;  %v994_v53 = vmul.f32 %v1181_v26, %v1735_v47  ;;  %v995_v57 = vmul.f32 %v1182_v27, %v1778_v14 }
 0x140   :  { %970 = vadd.xlane.f32.xlu1 %v969_v38  ;;  %v920_v56 = vadd.f32 %v919_v46, %v918_v40  ;;  %v921_v59 = vsel %vm420_vm4, %v908_v4, 0.0  ;;  %v923_v49 = vsel %vm420_vm4, %v909_v30, 0.0  ;;  %v1042_v61 = vmul.f32 %v1192_v41, %v1687_v21 }
 0x141   :  { %v1051_v63 = vadd.f32 %v1050_v43, %v1049_v52  ;;  %v1000_v47 = vsel %vm420_vm4, %v992_v44, 0.0  ;;  %v1001_v14 = vsel %vm420_vm4, %v993_v48, 0.0  ;;  %v1043_v0 = vmul.f32 %v1193_v51, %v1745_v58 }
 0x142   :  { %v922_v54 = vadd.f32 %v921_v59, %v920_v56  ;;  %v1052_v39 = vsel %vm420_vm4, %v1041_v12, 0.0  ;;  %v1002_v5 = vadd.f32 %v1001_v14, %v1000_v47  ;;  %v1003_v45 = vsel %vm420_vm4, %v994_v53, 0.0 }
 0x143   :  { %v1053_v7 = vadd.f32 %v1052_v39, %v1051_v63  ;;  %v996_v8 = vmul.f32 %v1183_v3, %v1606_v11  ;;  %v1005_v10 = vsel %vm420_vm4, %v995_v57, 0.0  ;;  %v1044_v15 = vmul.f32 %v1194_v62, %v1793_v28  ;;  %v1186_v11 = vld [vmem:[%s2075_s3 + $0x238] sm:$0xff] }
 0x144   :  { %v924_v6 = vadd.f32 %v923_v49, %v922_v54  ;;  %v1054_v55 = vsel %vm420_vm4, %v1042_v61, 0.0  ;;  %v1004_v35 = vadd.f32 %v1003_v45, %v1002_v5  ;;  %v997_v17 = vmul.f32 %v1184_v1, %v1687_v21 }
 0x145   :  { %v1055_v16 = vadd.f32 %v1054_v55, %v1053_v7  ;;  %v1056_v18 = vsel %vm420_vm4, %v1043_v0, 0.0  ;;  %v998_v20 = vmul.f32 %v1185_v13, %v1745_v58  ;;  %v1007_v22 = vsel %vm420_vm4, %v996_v8, 0.0 }
 0x146   :  { %925 = vadd.xlane.f32.xlu0 %v924_v6  ;;  %v1006_v60 = vadd.f32 %v1005_v10, %v1004_v35  ;;  %v1058_v23 = vsel %vm420_vm4, %v1044_v15, 0.0  ;;  %v999_v2 = vmul.f32 %v1186_v11, %v1793_v28  ;;  %v1009_v21 = vsel %vm420_vm4, %v997_v17, 0.0 }
 0x147   :  { %v1057_v19 = vadd.f32 %v1056_v18, %v1055_v16  ;;  %v1011_v4 = vsel %vm420_vm4, %v998_v20, 0.0 }
 0x148   :  { %v1008_v25 = vadd.f32 %v1007_v22, %v1006_v60  ;;  %v1013_v9 = vsel %vm420_vm4, %v999_v2, 0.0 }
 0x149   :  { %v1059_v29 = vadd.f32 %v1058_v23, %v1057_v19 }
 0x14a   :  { %v1010_v50 = vadd.f32 %v1009_v21, %v1008_v25 }
 0x14b   :  { %1060 = vadd.xlane.f32.xlu1 %v1059_v29 }
 0x14c   :  { %v1012_v30 = vadd.f32 %v1011_v4, %v1010_v50 }
 0x14e   :  { %v1014_v32 = vadd.f32 %v1013_v9, %v1012_v30 }
 0x150   :  { %1015 = vadd.xlane.f32.xlu0 %v1014_v32 }
 0x1b7   :  { %v746_v58 = vpop.xlane.xlu1 %745  ;;  %v656_v33 = vpop.xlane.xlu0 %655 }
 0x1b8   :  { %v747_v24 = vrot.slane %v746_v58, 4  ;;  %v657_v34 = vrot.slane %v656_v33, 4 }
 0x1ba   :  { %v748_v36 = vadd.f32 %v747_v24, %v746_v58  ;;  %v658_v31 = vadd.f32 %v657_v34, %v656_v33 }
 0x1bb   :  { %v791_v37 = vpop.xlane.xlu1 %790  ;;  %v701_v26 = vpop.xlane.xlu0 %700 }
 0x1bc   :  { %v749_v28 = vrot.slane %v748_v36, 2  ;;  %v659_v27 = vrot.slane %v658_v31, 2  ;;  %v792_v38 = vrot.slane %v791_v37, 4  ;;  %v702_v40 = vrot.slane %v701_v26, 4 }
 0x1be   :  { %v793_v46 = vadd.f32 %v792_v38, %v791_v37  ;;  %v703_v41 = vadd.f32 %v702_v40, %v701_v26  ;;  %v660_v42 = vadd.f32 %v659_v27, %v658_v31  ;;  %v750_v12 = vadd.f32 %v749_v28, %v748_v36  ;;  %v623_v38 = vld [vmem:[%s2076_s4] sm:$0x1] }
 0x1bf   :  { %v621_v37 = vlaneseq }
 0x1c0   :  { %v794_v43 = vrot.slane %v793_v46, 2  ;;  %v704_v44 = vrot.slane %v703_v41, 2  ;;  %v661_v48 = vrot.slane %v660_v42, 1  ;;  %v881_v56 = vpop.xlane.xlu1 %880  ;;  %v751_v57 = vrot.slane %v750_v12, 1 }
 0x1c1   :  { %v882_v51 = vrot.slane %v881_v56, 4  ;;  %v622_v26 = vand.u32 127, %v621_v37 }
 0x1c2   :  { %v662_v52 = vadd.f32 %v661_v48, %v660_v42  ;;  %v705_v53 = vadd.f32 %v704_v44, %v703_v41  ;;  %v795_v59 = vadd.f32 %v794_v43, %v793_v46  ;;  %v752_v63 = vadd.f32 %v751_v57, %v750_v12 }
 0x1c3   :  { %v883_v49 = vadd.f32 %v882_v51, %v881_v56  ;;  %vm664_vm6 = vcmp.eq.s32.totalorder %v622_v26, 0  ;;  %vm709_vm7 = vcmp.eq.s32.totalorder %v622_v26, 1  ;;  %vm754_vm8 = vcmp.eq.s32.totalorder %v622_v26, 2 }
 0x1c4   :  { %1289 = vpush %v662_v52  ;;  %v706_v61 = vrot.slane %v705_v53, 1  ;;  %v796_v3 = vrot.slane %v795_v59, 1  ;;  %vm799_vm9 = vcmp.eq.s32.totalorder %v622_v26, 3  ;;  %vm844_vm10 = vcmp.eq.s32.totalorder %v622_v26, 4 }
 0x1c5   :  { %v884_v54 = vrot.slane %v883_v49, 2  ;;  %vm889_vm11 = vcmp.eq.s32.totalorder %v622_v26, 5  ;;  %vm934_vm12 = vcmp.eq.s32.totalorder %v622_v26, 6  ;;  %vm979_vm13 = vcmp.eq.s32.totalorder %v622_v26, 7 }
 0x1c6   :  { %v707_v62 = vadd.f32 %v706_v61, %v705_v53  ;;  %v797_v47 = vadd.f32 %v796_v3, %v795_v59  ;;  %vm1024_vm14 = vcmp.eq.s32.totalorder %v622_v26, 8  ;;  %vm1069_vm15 = vcmp.eq.s32.totalorder %v622_v26, 9 }
 0x1c7   :  { %v885_v39 = vadd.f32 %v884_v54, %v883_v49 }
 0x1c8   :  { %v836_v14 = vpop.xlane.xlu0 %835  ;;  %1291 = vpush %v707_v62 }
 0x1c9   :  { %v837_v0 = vrot.slane %v836_v14, 4  ;;  %1293 = vpush %v752_v63  ;;  %v886_v7 = vrot.slane %v885_v39, 1 }
 0x1ca   :  { %1295 = vpush %v797_v47 }
 0x1cb   :  { %v838_v1 = vadd.f32 %v837_v0, %v836_v14  ;;  %v887_v13 = vadd.f32 %v886_v7, %v885_v39 }
 0x1cd   :  { %v839_v5 = vrot.slane %v838_v1, 2  ;;  %v971_v45 = vpop.xlane.xlu1 %970 }
 0x1ce   :  { %v972_v6 = vrot.slane %v971_v45, 4 }
 0x1cf   :  { %v840_v8 = vadd.f32 %v839_v5, %v838_v1 }
 0x1d0   :  { %v973_v10 = vadd.f32 %v972_v6, %v971_v45 }
 0x1d1   :  { %v841_v15 = vrot.slane %v840_v8, 1 }
 0x1d2   :  { %v974_v55 = vrot.slane %v973_v10, 2 }
 0x1d3   :  { %v926_v35 = vpop.xlane.xlu0 %925  ;;  %v842_v16 = vadd.f32 %v841_v15, %v840_v8 }
 0x1d4   :  { %v927_v17 = vrot.slane %v926_v35, 4  ;;  %v975_v18 = vadd.f32 %v974_v55, %v973_v10 }
 0x1d5   :  { %1297 = vpush %v842_v16 }
 0x1d6   :  { %v928_v11 = vadd.f32 %v927_v17, %v926_v35  ;;  %1299 = vpush %v887_v13  ;;  %v976_v20 = vrot.slane %v975_v18, 1 }
 0x1d8   :  { %v929_v60 = vrot.slane %v928_v11, 2  ;;  %v1061_v19 = vpop.xlane.xlu1 %1060  ;;  %v977_v2 = vadd.f32 %v976_v20, %v975_v18 }
 0x1d9   :  { %v1062_v22 = vrot.slane %v1061_v19, 4 }
 0x1da   :  { %v930_v23 = vadd.f32 %v929_v60, %v928_v11 }
 0x1db   :  { %v1063_v25 = vadd.f32 %v1062_v22, %v1061_v19 }
 0x1dc   :  { %v931_v29 = vrot.slane %v930_v23, 1 }
 0x1dd   :  { %v1064_v21 = vrot.slane %v1063_v25, 2  ;;  %v1016_v50 = vpop.xlane.xlu0 %1015 }
 0x1de   :  { %v932_v4 = vadd.f32 %v931_v29, %v930_v23  ;;  %v1017_v30 = vrot.slane %v1016_v50, 4 }
 0x1df   :  { %v1065_v9 = vadd.f32 %v1064_v21, %v1063_v25 }
 0x1e0   :  { %1301 = vpush %v932_v4  ;;  %v1018_v32 = vadd.f32 %v1017_v30, %v1016_v50 }
 0x1e1   :  { %1303 = vpush %v977_v2  ;;  %v1066_v33 = vrot.slane %v1065_v9, 1 }
 0x1e2   :  { %v1019_v58 = vrot.slane %v1018_v32, 2 }
 0x1e3   :  { %v1067_v36 = vadd.f32 %v1066_v33, %v1065_v9 }
 0x1e4   :  { %v1020_v24 = vadd.f32 %v1019_v58, %v1018_v32 }
 0x1e6   :  { %v1021_v34 = vrot.slane %v1020_v24, 1 }
 0x1e8   :  { %v1022_v31 = vadd.f32 %v1021_v34, %v1020_v24 }
 0x1ea   :  { %1305 = vpush %v1022_v31 }
 0x1eb   :  { %1307 = vpush %v1067_v36 }
 0x1f5   :  { %s1290_s3 = spop %1289 }
 0x1f6   :  { %v665_v28 = vstv %s1290_s3 }
 0x1f7   :  { %v666_v40 = vsel %vm664_vm6, %v665_v28, 0.0 }
 0x1f8   :  { %v667_v41 = vadd.f32 %v666_v40, %v623_v38 }
 0x1f9   :  { %s1292_s27 = spop %1291 }
 0x1fa   :  { %v710_v27 = vstv %s1292_s27  ;;  %s1294_s30 = spop %1293 }
 0x1fb   :  { %v711_v46 = vsel %vm709_vm7, %v710_v27, 0.0  ;;  %v755_v12 = vstv %s1294_s30  ;;  %s1296_s6 = spop %1295 }
 0x1fc   :  { %v712_v42 = vadd.f32 %v711_v46, %v667_v41  ;;  %v756_v43 = vsel %vm754_vm8, %v755_v12, 0.0  ;;  %v800_v48 = vstv %s1296_s6 }
 0x1fd   :  { %v801_v56 = vsel %vm799_vm9, %v800_v48, 0.0 }
 0x1fe   :  { %v757_v44 = vadd.f32 %v756_v43, %v712_v42 }
 0x200   :  { %v802_v51 = vadd.f32 %v801_v56, %v757_v44 }
 0x206   :  { %s1298_s7 = spop %1297 }
 0x207   :  { %v845_v52 = vstv %s1298_s7  ;;  %s1300_s8 = spop %1299 }
 0x208   :  { %v846_v53 = vsel %vm844_vm10, %v845_v52, 0.0  ;;  %v890_v59 = vstv %s1300_s8 }
 0x209   :  { %v847_v57 = vadd.f32 %v846_v53, %v802_v51  ;;  %v891_v49 = vsel %vm889_vm11, %v890_v59, 0.0 }
 0x20b   :  { %v892_v61 = vadd.f32 %v891_v49, %v847_v57 }
 0x211   :  { %s1302_s4 = spop %1301 }
 0x212   :  { %v935_v3 = vstv %s1302_s4  ;;  %s1304_s9 = spop %1303 }
 0x213   :  { %v936_v54 = vsel %vm934_vm12, %v935_v3, 0.0  ;;  %v980_v63 = vstv %s1304_s9 }
 0x214   :  { %v937_v62 = vadd.f32 %v936_v54, %v892_v61  ;;  %v981_v47 = vsel %vm979_vm13, %v980_v63, 0.0 }
 0x216   :  { %v982_v14 = vadd.f32 %v981_v47, %v937_v62 }
 0x21b   :  { %s1306_s0 = spop %1305 }
 0x21c   :  { %v1025_v0 = vstv %s1306_s0  ;;  %s1308_s2 = spop %1307 }
 0x21d   :  { %v1026_v39 = vsel %vm1024_vm14, %v1025_v0, 0.0  ;;  %v1070_v1 = vstv %s1308_s2 }
 0x21e   :  { %v1027_v5 = vadd.f32 %v1026_v39, %v982_v14  ;;  %v1071_v45 = vsel %vm1069_vm15, %v1070_v1, 0.0 }
 0x220   :  { %v1072_v6 = vadd.f32 %v1071_v45, %v1027_v5 }
 0x222   :  { %1074 = vst.msk [vmem:[#allocation4] sm:$0x1] %vm1073_vm0, %v1072_v6 }
 0x223   :  { %1322 = shalt.err (!%p1319_p4)
}
 0x224   :  { %s1323_s16 = scalar_lea.hbm %s2077_s5, 16 }
 0x225   :  { %p1324_p5 = scmp.ne.s32.totalorder %s2077_s5, %s1323_s16  ;;  %p1327_p6 = scmp.lt.u32.totalorder %s1323_s16, %s2077_s5 }
 0x227   :  { %p1329_p7 = pnand %p1327_p6, %p1324_p5 }
 0x229   :  { %1332 = shalt.err (!%p1329_p7)
}
 0x22a   :  { %1084 = dma.vmem_to_hbm [thread:$0]  %s1082_s11, 16, %s2077_s5, [#allocation5]  }
 0x22b   :  { %1333 = dma.done.wait [#allocation5], 16  }
 0x22c   :  { %1334 = vsyncadd [#allocation5], 4294967280 }
 0x22d   :  { %1088 = vsyncpa [#allocation5], 1 }

</bundles_post_ra>
